<compile_context>
chip_gen: v5e
topology: v5e:2x2
jax: 0.10.0
libtpu: 0.0.40
codegen_flags: <defaults>
</compile_context>

<pallas_src>
import functools

import jax
import jax.numpy as jnp
from jax.experimental import pallas as pl
from jax.experimental.pallas import tpu as pltpu

LN_EPS = 1e-5
# Speed/accuracy knob: HIGHEST keeps torch-f32 parity; default precision would
# run the (tiny) matmuls as bf16 passes — irrelevant here since HBM-bound.
_MM_PRECISION = jax.lax.Precision.HIGHEST


def _round_up(x, m):
    return (x + m - 1) // m * m


# ----------------------------------------------------------------------------
# Kernel
# ----------------------------------------------------------------------------
def _fused_fc_kernel(n_layers, x_ref, *refs):
    """All LayerNorm -> Linear -> ReLU layers fused; batch on the lane axis.

    x_ref : (TILE_B, d_in) natural-layout activation tile.
    refs  : 2*n_layers folded parameter refs followed by the output ref.
            hidden n : w (H, D) torch (out,in) with LN gamma folded in,
                       bias (H, 1)  (LN beta folded in)
            last     : w (H, 1) column, bias (1, 1)
    out   : (1, TILE_B) lane-dense tile of the squeezed prediction.
    """
    param_refs = refs[:-1]
    out_ref = refs[-1]

    # (TILE_B, d_in) -> (d_in, TILE_B): features on sublanes, batch on lanes.
    # XLU transpose, hidden under the HBM-bound x stream (no wrapper copy).
    h = x_ref[...].T

    for n in range(n_layers):                            # static unroll
        w = param_refs[2 * n][...]
        bias = param_refs[2 * n + 1][...]

        # LayerNorm statistics over the feature (sublane) axis; biased
        # variance, eps inside rsqrt -> torch.nn.LayerNorm semantics.
        mean = jnp.mean(h, axis=0, keepdims=True)        # (1, TB)
        hc = h - mean
        var = jnp.mean(hc * hc, axis=0, keepdims=True)   # (1, TB)
        y = hc * jax.lax.rsqrt(var + LN_EPS)             # (D, TB); affine folded into w/bias

        if n < n_layers - 1:
            # MXU: (H, D) @ (D, TB) -> (H, TB); batch stays lane-dense.
            z = jnp.dot(w, y, precision=_MM_PRECISION,
                        preferred_element_type=jnp.float32) + bias
        else:
            # Final h_size -> 1 layer as VPU multiply + sublane (XLU) reduce:
            # avoids a 1-wide MXU call, yields a lane-dense (1, TB) row.
            z = jnp.sum(y * w, axis=0, keepdims=True) + bias

        h = jnp.maximum(z, 0.0)                          # ReLU

    out_ref[...] = h                                     # (1, TB) float32


# ----------------------------------------------------------------------------
# Tiling / VMEM heuristics
# ----------------------------------------------------------------------------
def _vmem_capacity_bytes():
    try:
        return int(pltpu.get_tpu_info().vmem_capacity_bytes)
    except Exception:
        return 64 * 1024 * 1024          # conservative (v7x per-core VMEM)


def _vmem_estimate_bytes(tile_b, d_in, max_width, param_bytes, single_buffer_params):
    est = 2 * tile_b * d_in * 4                              # double-buffered x stream
    est += (1 if single_buffer_params else 2) * param_bytes  # VMEM-resident weights
    est += 2 * 8 * tile_b * 4                                # (1, TB) output buffers
    est += 6 * max_width * tile_b * 4                        # transpose + LN/matmul temporaries
    return est


def _pick_tile_b(B, d_in, max_width, param_bytes, single_buffer_params, vmem_budget):
    tile_b = 128
    for t in (1024, 512, 256, 128):
        b_pad = _round_up(B, t)
        if B > 128 and b_pad // t < 2:
            continue                      # keep grid >= 2: both v7x TensorCores busy
        if b_pad - B <= max(b_pad // 8, 127):
            tile_b = t                    # largest tile with bounded pad waste
            break
    while tile_b > 128 and _vmem_estimate_bytes(
            tile_b, d_in, max_width, param_bytes, single_buffer_params) > vmem_budget:
        tile_b //= 2
    return tile_b


# ----------------------------------------------------------------------------
# Forward wrapper
# ----------------------------------------------------------------------------
@functools.partial(jax.jit, static_argnames=("single_buffer_params",))
def fc_prediction_forward(x, params, *, single_buffer_params=True):
    """x: (B, input_size) -> (B,) float32.

    params: list (length n_layers) of (w, bias) in kernel layout, i.e. the
    output of fold_params_for_kernel().
    """
    n_layers = len(params)
    x = x.astype(jnp.float32)            # self.double == False path
    B, d_in = x.shape
    assert d_in == params[0][0].shape[1], "input_size mismatch"

    flat_params = [p for layer in params for p in layer]
    param_bytes = sum(p.size * p.dtype.itemsize for p in flat_params)
    max_width = max([d_in] + [max(p.shape) for p in flat_params])

    vmem_budget = int(0.70 * _vmem_capacity_bytes())
    tile_b = _pick_tile_b(B, d_in, max_width, param_bytes,
                          single_buffer_params, vmem_budget)

    # Only sub-tile batches need a (tiny) pad so one full lane tile exists;
    # otherwise x is streamed untouched and ragged tail blocks are handled by
    # Pallas boundary masking (garbage stays in its own batch lane and is
    # sliced off below).
    if B < tile_b:
        x = jnp.pad(x, ((0, tile_b - B), (0, 0)))
    b_rows = x.shape[0]
    grid = (pl.cdiv(b_rows, tile_b),)

    x_spec = pl.BlockSpec((tile_b, d_in), lambda i: (i, 0))
    if single_buffer_params:
        # Constant index_maps: weights are DMA'd once and stay VMEM-resident;
        # single-buffering them halves their VMEM footprint (matters on v7x).
        param_specs = [pl.BlockSpec(p.shape, lambda i: (0, 0),
                                    pipeline_mode=pl.Buffered(1))
                       for p in flat_params]
    else:
        param_specs = [pl.BlockSpec(p.shape, lambda i: (0, 0))
                       for p in flat_params]

    vmem_limit = min(
        vmem_budget,
        max(32 * 1024 * 1024,
            int(1.25 * _vmem_estimate_bytes(tile_b, d_in, max_width,
                                            param_bytes, single_buffer_params))))

    out = pl.pallas_call(
        functools.partial(_fused_fc_kernel, n_layers),
        out_shape=jax.ShapeDtypeStruct((1, b_rows), jnp.float32),
        grid=grid,
        in_specs=[x_spec] + param_specs,
        out_specs=pl.BlockSpec((1, tile_b), lambda i: (0, i)),
        compiler_params=pltpu.CompilerParams(
            dimension_semantics=("parallel",),
            vmem_limit_bytes=vmem_limit),
    )(x, *flat_params)

    return out[0, :B]                                    # (B,)


# ----------------------------------------------------------------------------
# Parameters
# ----------------------------------------------------------------------------
def init_fc_prediction_params(key, input_size, n_layers, h_size,
                              dtype=jnp.float32, perturb_layernorm=False):
    """Torch-style raw parameters, one tuple (ln_gamma, ln_beta, W, b) per layer.

    Linear: W (out, in), b (out,) ~ U(-1/sqrt(fan_in), 1/sqrt(fan_in)).
    LayerNorm defaults: gamma=1, beta=0.  perturb_layernorm=True adds a small
    random affine so the gamma/beta-folding path is actually exercised.
    Layers: fc_1 (input->h), fc_2..fc_{n_layers-1} (h->h), fc_last (h->1).
    """
    assert n_layers >= 2
    dims = [(input_size, h_size)] + [(h_size, h_size)] * (n_layers - 2) + [(h_size, 1)]
    params = []
    for din, dout in dims:
        key, kw, kb, kg, kbeta = jax.random.split(key, 5)
        bound = 1.0 / (din ** 0.5)
        w = jax.random.uniform(kw, (dout, din), dtype, -bound, bound)
        b = jax.random.uniform(kb, (dout,), dtype, -bound, bound)
        gamma = jnp.ones((din,), dtype)
        beta = jnp.zeros((din,), dtype)
        if perturb_layernorm:
            gamma = gamma + 0.1 * jax.random.uniform(kg, (din,), dtype, -1.0, 1.0)
            beta = beta + 0.1 * jax.random.uniform(kbeta, (din,), dtype, -1.0, 1.0)
        params.append((gamma, beta, w, b))
    return params


def fold_params_for_kernel(raw_params):
    """Fold each LayerNorm affine into the following Linear and lay out for the
    kernel:  W@(g*norm(x)+beta)+b == (W*g)@norm(x) + (W@beta + b).
    Hidden weights keep torch (out, in) layout; the last (h_size -> 1) weight
    is stored as an (h_size, 1) column (VPU-reduce path); biases are (out, 1)
    columns (lane-broadcast friendly)."""
    n = len(raw_params)
    folded = []
    for idx, (gamma, beta, w, b) in enumerate(raw_params):
        w_f = (w * gamma[None, :]).astype(jnp.float32)
        b_f = (w @ beta + b).astype(jnp.float32)
        w_k = w_f.T if idx == n - 1 else w_f
        folded.append((w_k, b_f.reshape(-1, 1)))
    return folded


def _reference_forward(x, raw_params):
    """Pure-JAX reference with torch semantics (unfolded parameters)."""
    h = x.astype(jnp.float32)
    for gamma, beta, w, b in raw_params:
        mean = jnp.mean(h, axis=-1, keepdims=True)
        var = jnp.mean((h - mean) ** 2, axis=-1, keepdims=True)
        y = (h - mean) * jax.lax.rsqrt(var + LN_EPS) * gamma + beta
        z = jnp.dot(y, w.T, precision=_MM_PRECISION) + b
        h = jnp.maximum(z, 0.0)
    return jnp.squeeze(h, axis=-1)


if __name__ == "__main__":
    batch = 8
    input_size = 32
    n_layers = 3
    h_size = 32

    key = jax.random.PRNGKey(0)
    key_x, key_p = jax.random.split(key)
    x = jax.random.normal(key_x, (batch, input_size), dtype=jnp.float32)
    raw_params = init_fc_prediction_params(key_p, input_size, n_layers, h_size,
                                           perturb_layernorm=True)
    params = fold_params_for_kernel(raw_params)

    try:
        out = jax.block_until_ready(fc_prediction_forward(x, params))
    except Exception:
        # pl.Buffered(1) single-buffered params unsupported on this jax/libtpu:
        # fall back to default (double-buffered) parameter BlockSpecs.
        out = jax.block_until_ready(
            fc_prediction_forward(x, params, single_buffer_params=False))

    ref = _reference_forward(x, raw_params)
    assert out.shape == (batch,)
    assert out.dtype == jnp.float32
    assert jnp.allclose(out, ref, atol=1e-3, rtol=1e-3), float(
        jnp.max(jnp.abs(out - ref)))
    print("KERNEL_OK")
</pallas_src>

<mosaic_0001>
module attributes {stable_mosaic.version = 11 : i64} {
  func.func @_fused_fc_kernel(%arg0: i32, %arg1: memref<128x32xf32, #tpu.memory_space<vmem>>, %arg2: memref<32x32xf32, #tpu.memory_space<vmem>>, %arg3: memref<32x1xf32, #tpu.memory_space<vmem>>, %arg4: memref<32x32xf32, #tpu.memory_space<vmem>>, %arg5: memref<32x1xf32, #tpu.memory_space<vmem>>, %arg6: memref<32x1xf32, #tpu.memory_space<vmem>>, %arg7: memref<1x1xf32, #tpu.memory_space<vmem>>, %arg8: memref<1x128xf32, #tpu.memory_space<vmem>>) attributes {dimension_semantics = [#tpu.dimension_semantics<parallel>], iteration_bounds = array<i64: 1>, scalar_prefetch = 0 : i64, scratch_operands = 0 : i64, tpu.core_type = #tpu.core_type<tc>, window_params = [{transform_indices = @transform_0, window_bounds = array<i64: 128, 32>}, {pipeline_mode = #tpu.pipeline_mode<synchronous>, transform_indices = @transform_1, window_bounds = array<i64: 32, 32>}, {pipeline_mode = #tpu.pipeline_mode<synchronous>, transform_indices = @transform_2, window_bounds = array<i64: 32, 1>}, {pipeline_mode = #tpu.pipeline_mode<synchronous>, transform_indices = @transform_3, window_bounds = array<i64: 32, 32>}, {pipeline_mode = #tpu.pipeline_mode<synchronous>, transform_indices = @transform_4, window_bounds = array<i64: 32, 1>}, {pipeline_mode = #tpu.pipeline_mode<synchronous>, transform_indices = @transform_5, window_bounds = array<i64: 32, 1>}, {pipeline_mode = #tpu.pipeline_mode<synchronous>, transform_indices = @transform_6, window_bounds = array<i64: 1, 1>}, {transform_indices = @transform_7, window_bounds = array<i64: 1, 128>}]} {
    %c0 = arith.constant 0 : index
    %c0_0 = arith.constant 0 : index
    %0 = vector.load %arg1[%c0, %c0_0] : memref<128x32xf32, #tpu.memory_space<vmem>>, vector<128x32xf32>
    %1 = tpu.transpose %0, [1, 0] : vector<128x32xf32> -> vector<32x128xf32>
    %c0_1 = arith.constant 0 : index
    %c0_2 = arith.constant 0 : index
    %2 = vector.load %arg2[%c0_1, %c0_2] : memref<32x32xf32, #tpu.memory_space<vmem>>, vector<32x32xf32>
    %c0_3 = arith.constant 0 : index
    %c0_4 = arith.constant 0 : index
    %3 = vector.load %arg3[%c0_3, %c0_4] : memref<32x1xf32, #tpu.memory_space<vmem>>, vector<32x1xf32>
    %cst = arith.constant dense<0.000000e+00> : vector<128xf32>
    %4 = vector.multi_reduction <add>, %1, %cst [0] : vector<32x128xf32> to vector<128xf32>
    %5 = vector.shape_cast %4 : vector<128xf32> to vector<1x128xf32>
    %cst_5 = arith.constant 3.200000e+01 : f32
    %6 = vector.broadcast %cst_5 : f32 to vector<1x128xf32>
    %7 = arith.divf %5, %6 : vector<1x128xf32>
    %8 = vector.broadcast %7 : vector<1x128xf32> to vector<32x128xf32>
    %9 = arith.subf %1, %8 : vector<32x128xf32>
    %10 = arith.mulf %9, %9 : vector<32x128xf32>
    %cst_6 = arith.constant dense<0.000000e+00> : vector<128xf32>
    %11 = vector.multi_reduction <add>, %10, %cst_6 [0] : vector<32x128xf32> to vector<128xf32>
    %12 = vector.shape_cast %11 : vector<128xf32> to vector<1x128xf32>
    %cst_7 = arith.constant 3.200000e+01 : f32
    %13 = vector.broadcast %cst_7 : f32 to vector<1x128xf32>
    %14 = arith.divf %12, %13 : vector<1x128xf32>
    %cst_8 = arith.constant 9.99999974E-6 : f32
    %15 = vector.broadcast %cst_8 : f32 to vector<1x128xf32>
    %16 = arith.addf %14, %15 : vector<1x128xf32>
    %17 = math.rsqrt %16 : vector<1x128xf32>
    %18 = vector.broadcast %17 : vector<1x128xf32> to vector<32x128xf32>
    %19 = arith.mulf %9, %18 : vector<32x128xf32>
    %cst_9 = arith.constant dense<0.000000e+00> : vector<32x128xf32>
    %20 = tpu.matmul %2, %19, %cst_9 {dimension_numbers = #tpu.dot_dimension_numbers<[1], [0], [0], [1], [0, 0, 1, 1], [], []>, precision = #tpu.contract_precision<fp32>} : vector<32x32xf32>, vector<32x128xf32>, vector<32x128xf32> -> vector<32x128xf32>
    %21 = vector.broadcast %3 : vector<32x1xf32> to vector<32x128xf32>
    %22 = arith.addf %20, %21 : vector<32x128xf32>
    %cst_10 = arith.constant 0.000000e+00 : f32
    %23 = vector.broadcast %cst_10 : f32 to vector<32x128xf32>
    %24 = arith.maximumf %22, %23 : vector<32x128xf32>
    %c0_11 = arith.constant 0 : index
    %c0_12 = arith.constant 0 : index
    %25 = vector.load %arg4[%c0_11, %c0_12] : memref<32x32xf32, #tpu.memory_space<vmem>>, vector<32x32xf32>
    %c0_13 = arith.constant 0 : index
    %c0_14 = arith.constant 0 : index
    %26 = vector.load %arg5[%c0_13, %c0_14] : memref<32x1xf32, #tpu.memory_space<vmem>>, vector<32x1xf32>
    %cst_15 = arith.constant dense<0.000000e+00> : vector<128xf32>
    %27 = vector.multi_reduction <add>, %24, %cst_15 [0] : vector<32x128xf32> to vector<128xf32>
    %28 = vector.shape_cast %27 : vector<128xf32> to vector<1x128xf32>
    %cst_16 = arith.constant 3.200000e+01 : f32
    %29 = vector.broadcast %cst_16 : f32 to vector<1x128xf32>
    %30 = arith.divf %28, %29 : vector<1x128xf32>
    %31 = vector.broadcast %30 : vector<1x128xf32> to vector<32x128xf32>
    %32 = arith.subf %24, %31 : vector<32x128xf32>
    %33 = arith.mulf %32, %32 : vector<32x128xf32>
    %cst_17 = arith.constant dense<0.000000e+00> : vector<128xf32>
    %34 = vector.multi_reduction <add>, %33, %cst_17 [0] : vector<32x128xf32> to vector<128xf32>
    %35 = vector.shape_cast %34 : vector<128xf32> to vector<1x128xf32>
    %cst_18 = arith.constant 3.200000e+01 : f32
    %36 = vector.broadcast %cst_18 : f32 to vector<1x128xf32>
    %37 = arith.divf %35, %36 : vector<1x128xf32>
    %cst_19 = arith.constant 9.99999974E-6 : f32
    %38 = vector.broadcast %cst_19 : f32 to vector<1x128xf32>
    %39 = arith.addf %37, %38 : vector<1x128xf32>
    %40 = math.rsqrt %39 : vector<1x128xf32>
    %41 = vector.broadcast %40 : vector<1x128xf32> to vector<32x128xf32>
    %42 = arith.mulf %32, %41 : vector<32x128xf32>
    %cst_20 = arith.constant dense<0.000000e+00> : vector<32x128xf32>
    %43 = tpu.matmul %25, %42, %cst_20 {dimension_numbers = #tpu.dot_dimension_numbers<[1], [0], [0], [1], [0, 0, 1, 1], [], []>, precision = #tpu.contract_precision<fp32>} : vector<32x32xf32>, vector<32x128xf32>, vector<32x128xf32> -> vector<32x128xf32>
    %44 = vector.broadcast %26 : vector<32x1xf32> to vector<32x128xf32>
    %45 = arith.addf %43, %44 : vector<32x128xf32>
    %cst_21 = arith.constant 0.000000e+00 : f32
    %46 = vector.broadcast %cst_21 : f32 to vector<32x128xf32>
    %47 = arith.maximumf %45, %46 : vector<32x128xf32>
    %c0_22 = arith.constant 0 : index
    %c0_23 = arith.constant 0 : index
    %48 = vector.load %arg6[%c0_22, %c0_23] : memref<32x1xf32, #tpu.memory_space<vmem>>, vector<32x1xf32>
    %c0_24 = arith.constant 0 : index
    %c0_25 = arith.constant 0 : index
    %49 = vector.load %arg7[%c0_24, %c0_25] : memref<1x1xf32, #tpu.memory_space<vmem>>, vector<1x1xf32>
    %cst_26 = arith.constant dense<0.000000e+00> : vector<128xf32>
    %50 = vector.multi_reduction <add>, %47, %cst_26 [0] : vector<32x128xf32> to vector<128xf32>
    %51 = vector.shape_cast %50 : vector<128xf32> to vector<1x128xf32>
    %cst_27 = arith.constant 3.200000e+01 : f32
    %52 = vector.broadcast %cst_27 : f32 to vector<1x128xf32>
    %53 = arith.divf %51, %52 : vector<1x128xf32>
    %54 = vector.broadcast %53 : vector<1x128xf32> to vector<32x128xf32>
    %55 = arith.subf %47, %54 : vector<32x128xf32>
    %56 = arith.mulf %55, %55 : vector<32x128xf32>
    %cst_28 = arith.constant dense<0.000000e+00> : vector<128xf32>
    %57 = vector.multi_reduction <add>, %56, %cst_28 [0] : vector<32x128xf32> to vector<128xf32>
    %58 = vector.shape_cast %57 : vector<128xf32> to vector<1x128xf32>
    %cst_29 = arith.constant 3.200000e+01 : f32
    %59 = vector.broadcast %cst_29 : f32 to vector<1x128xf32>
    %60 = arith.divf %58, %59 : vector<1x128xf32>
    %cst_30 = arith.constant 9.99999974E-6 : f32
    %61 = vector.broadcast %cst_30 : f32 to vector<1x128xf32>
    %62 = arith.addf %60, %61 : vector<1x128xf32>
    %63 = math.rsqrt %62 : vector<1x128xf32>
    %64 = vector.broadcast %63 : vector<1x128xf32> to vector<32x128xf32>
    %65 = arith.mulf %55, %64 : vector<32x128xf32>
    %66 = vector.broadcast %48 : vector<32x1xf32> to vector<32x128xf32>
    %67 = arith.mulf %65, %66 : vector<32x128xf32>
    %cst_31 = arith.constant dense<0.000000e+00> : vector<128xf32>
    %68 = vector.multi_reduction <add>, %67, %cst_31 [0] : vector<32x128xf32> to vector<128xf32>
    %69 = vector.shape_cast %68 : vector<128xf32> to vector<1x128xf32>
    %70 = vector.broadcast %49 : vector<1x1xf32> to vector<1x128xf32>
    %71 = arith.addf %69, %70 : vector<1x128xf32>
    %cst_32 = arith.constant 0.000000e+00 : f32
    %72 = vector.broadcast %cst_32 : f32 to vector<1x128xf32>
    %73 = arith.maximumf %71, %72 : vector<1x128xf32>
    %c0_33 = arith.constant 0 : index
    %c0_34 = arith.constant 0 : index
    %74 = vector.load %arg8[%c0_33, %c0_34] : memref<1x128xf32, #tpu.memory_space<vmem>>, vector<1x128xf32>
    tpu.vector_store %arg8[%c0_33, %c0_34], %73 {strides = array<i32>} : memref<1x128xf32, #tpu.memory_space<vmem>>, vector<1x128xf32>,
    return
  }
  func.func @transform_0(%arg0: i32) -> (i32, i32) {
    %c0_i32 = arith.constant 0 : i32
    %c0_i32_0 = arith.constant 0 : i32
    return %arg0, %c0_i32 : i32, i32
  }
  func.func @transform_1(%arg0: i32) -> (i32, i32) {
    %c0_i32 = arith.constant 0 : i32
    %c0_i32_0 = arith.constant 0 : i32
    %c0_i32_1 = arith.constant 0 : i32
    return %c0_i32, %c0_i32_0 : i32, i32
  }
  func.func @transform_2(%arg0: i32) -> (i32, i32) {
    %c0_i32 = arith.constant 0 : i32
    %c0_i32_0 = arith.constant 0 : i32
    %c0_i32_1 = arith.constant 0 : i32
    return %c0_i32, %c0_i32_0 : i32, i32
  }
  func.func @transform_3(%arg0: i32) -> (i32, i32) {
    %c0_i32 = arith.constant 0 : i32
    %c0_i32_0 = arith.constant 0 : i32
    %c0_i32_1 = arith.constant 0 : i32
    return %c0_i32, %c0_i32_0 : i32, i32
  }
  func.func @transform_4(%arg0: i32) -> (i32, i32) {
    %c0_i32 = arith.constant 0 : i32
    %c0_i32_0 = arith.constant 0 : i32
    %c0_i32_1 = arith.constant 0 : i32
    return %c0_i32, %c0_i32_0 : i32, i32
  }
  func.func @transform_5(%arg0: i32) -> (i32, i32) {
    %c0_i32 = arith.constant 0 : i32
    %c0_i32_0 = arith.constant 0 : i32
    %c0_i32_1 = arith.constant 0 : i32
    return %c0_i32, %c0_i32_0 : i32, i32
  }
  func.func @transform_6(%arg0: i32) -> (i32, i32) {
    %c0_i32 = arith.constant 0 : i32
    %c0_i32_0 = arith.constant 0 : i32
    %c0_i32_1 = arith.constant 0 : i32
    return %c0_i32, %c0_i32_0 : i32, i32
  }
  func.func @transform_7(%arg0: i32) -> (i32, i32) {
    %c0_i32 = arith.constant 0 : i32
    %c0_i32_0 = arith.constant 0 : i32
    return %c0_i32, %arg0 : i32, i32
  }
}

module attributes {stable_mosaic.version = 11 : i64} {
  func.func @_fused_fc_kernel(%arg0: i32, %arg1: memref<128x32xf32, #tpu.memory_space<vmem>>, %arg2: memref<32x32xf32, #tpu.memory_space<vmem>>, %arg3: memref<32x1xf32, #tpu.memory_space<vmem>>, %arg4: memref<32x32xf32, #tpu.memory_space<vmem>>, %arg5: memref<32x1xf32, #tpu.memory_space<vmem>>, %arg6: memref<32x1xf32, #tpu.memory_space<vmem>>, %arg7: memref<1x1xf32, #tpu.memory_space<vmem>>, %arg8: memref<1x128xf32, #tpu.memory_space<vmem>>) attributes {dimension_semantics = [#tpu.dimension_semantics<parallel>], iteration_bounds = array<i64: 1>, scalar_prefetch = 0 : i64, scratch_operands = 0 : i64, tpu.core_type = #tpu.core_type<tc>, window_params = [{transform_indices = @transform_0, window_bounds = array<i64: 128, 32>}, {pipeline_mode = #tpu.pipeline_mode<synchronous>, transform_indices = @transform_1, window_bounds = array<i64: 32, 32>}, {pipeline_mode = #tpu.pipeline_mode<synchronous>, transform_indices = @transform_2, window_bounds = array<i64: 32, 1>}, {pipeline_mode = #tpu.pipeline_mode<synchronous>, transform_indices = @transform_3, window_bounds = array<i64: 32, 32>}, {pipeline_mode = #tpu.pipeline_mode<synchronous>, transform_indices = @transform_4, window_bounds = array<i64: 32, 1>}, {pipeline_mode = #tpu.pipeline_mode<synchronous>, transform_indices = @transform_5, window_bounds = array<i64: 32, 1>}, {pipeline_mode = #tpu.pipeline_mode<synchronous>, transform_indices = @transform_6, window_bounds = array<i64: 1, 1>}, {transform_indices = @transform_7, window_bounds = array<i64: 1, 128>}]} {
    %c0 = arith.constant 0 : index
    %c0_0 = arith.constant 0 : index
    %0 = vector.load %arg1[%c0, %c0_0] : memref<128x32xf32, #tpu.memory_space<vmem>>, vector<128x32xf32>
    %1 = tpu.transpose %0, [1, 0] : vector<128x32xf32> -> vector<32x128xf32>
    %c0_1 = arith.constant 0 : index
    %c0_2 = arith.constant 0 : index
    %2 = vector.load %arg2[%c0_1, %c0_2] : memref<32x32xf32, #tpu.memory_space<vmem>>, vector<32x32xf32>
    %c0_3 = arith.constant 0 : index
    %c0_4 = arith.constant 0 : index
    %3 = vector.load %arg3[%c0_3, %c0_4] : memref<32x1xf32, #tpu.memory_space<vmem>>, vector<32x1xf32>
    %cst = arith.constant dense<0.000000e+00> : vector<128xf32>
    %4 = vector.multi_reduction <add>, %1, %cst [0] : vector<32x128xf32> to vector<128xf32>
    %5 = vector.shape_cast %4 : vector<128xf32> to vector<1x128xf32>
    %cst_5 = arith.constant 3.200000e+01 : f32
    %6 = vector.broadcast %cst_5 : f32 to vector<1x128xf32>
    %7 = arith.divf %5, %6 : vector<1x128xf32>
    %8 = vector.broadcast %7 : vector<1x128xf32> to vector<32x128xf32>
    %9 = arith.subf %1, %8 : vector<32x128xf32>
    %10 = arith.mulf %9, %9 : vector<32x128xf32>
    %cst_6 = arith.constant dense<0.000000e+00> : vector<128xf32>
    %11 = vector.multi_reduction <add>, %10, %cst_6 [0] : vector<32x128xf32> to vector<128xf32>
    %12 = vector.shape_cast %11 : vector<128xf32> to vector<1x128xf32>
    %cst_7 = arith.constant 3.200000e+01 : f32
    %13 = vector.broadcast %cst_7 : f32 to vector<1x128xf32>
    %14 = arith.divf %12, %13 : vector<1x128xf32>
    %cst_8 = arith.constant 9.99999974E-6 : f32
    %15 = vector.broadcast %cst_8 : f32 to vector<1x128xf32>
    %16 = arith.addf %14, %15 : vector<1x128xf32>
    %17 = math.rsqrt %16 : vector<1x128xf32>
    %18 = vector.broadcast %17 : vector<1x128xf32> to vector<32x128xf32>
    %19 = arith.mulf %9, %18 : vector<32x128xf32>
    %cst_9 = arith.constant dense<0.000000e+00> : vector<32x128xf32>
    %20 = tpu.matmul %2, %19, %cst_9 {dimension_numbers = #tpu.dot_dimension_numbers<[1], [0], [0], [1], [0, 0, 1, 1], [], []>, precision = #tpu.contract_precision<fp32>} : vector<32x32xf32>, vector<32x128xf32>, vector<32x128xf32> -> vector<32x128xf32>
    %21 = vector.broadcast %3 : vector<32x1xf32> to vector<32x128xf32>
    %22 = arith.addf %20, %21 : vector<32x128xf32>
    %cst_10 = arith.constant 0.000000e+00 : f32
    %23 = vector.broadcast %cst_10 : f32 to vector<32x128xf32>
    %24 = arith.maximumf %22, %23 : vector<32x128xf32>
    %c0_11 = arith.constant 0 : index
    %c0_12 = arith.constant 0 : index
    %25 = vector.load %arg4[%c0_11, %c0_12] : memref<32x32xf32, #tpu.memory_space<vmem>>, vector<32x32xf32>
    %c0_13 = arith.constant 0 : index
    %c0_14 = arith.constant 0 : index
    %26 = vector.load %arg5[%c0_13, %c0_14] : memref<32x1xf32, #tpu.memory_space<vmem>>, vector<32x1xf32>
    %cst_15 = arith.constant dense<0.000000e+00> : vector<128xf32>
    %27 = vector.multi_reduction <add>, %24, %cst_15 [0] : vector<32x128xf32> to vector<128xf32>
    %28 = vector.shape_cast %27 : vector<128xf32> to vector<1x128xf32>
    %cst_16 = arith.constant 3.200000e+01 : f32
    %29 = vector.broadcast %cst_16 : f32 to vector<1x128xf32>
    %30 = arith.divf %28, %29 : vector<1x128xf32>
    %31 = vector.broadcast %30 : vector<1x128xf32> to vector<32x128xf32>
    %32 = arith.subf %24, %31 : vector<32x128xf32>
    %33 = arith.mulf %32, %32 : vector<32x128xf32>
    %cst_17 = arith.constant dense<0.000000e+00> : vector<128xf32>
    %34 = vector.multi_reduction <add>, %33, %cst_17 [0] : vector<32x128xf32> to vector<128xf32>
    %35 = vector.shape_cast %34 : vector<128xf32> to vector<1x128xf32>
    %cst_18 = arith.constant 3.200000e+01 : f32
    %36 = vector.broadcast %cst_18 : f32 to vector<1x128xf32>
    %37 = arith.divf %35, %36 : vector<1x128xf32>
    %cst_19 = arith.constant 9.99999974E-6 : f32
    %38 = vector.broadcast %cst_19 : f32 to vector<1x128xf32>
    %39 = arith.addf %37, %38 : vector<1x128xf32>
    %40 = math.rsqrt %39 : vector<1x128xf32>
    %41 = vector.broadcast %40 : vector<1x128xf32> to vector<32x128xf32>
    %42 = arith.mulf %32, %41 : vector<32x128xf32>
    %cst_20 = arith.constant dense<0.000000e+00> : vector<32x128xf32>
    %43 = tpu.matmul %25, %42, %cst_20 {dimension_numbers = #tpu.dot_dimension_numbers<[1], [0], [0], [1], [0, 0, 1, 1], [], []>, precision = #tpu.contract_precision<fp32>} : vector<32x32xf32>, vector<32x128xf32>, vector<32x128xf32> -> vector<32x128xf32>
    %44 = vector.broadcast %26 : vector<32x1xf32> to vector<32x128xf32>
    %45 = arith.addf %43, %44 : vector<32x128xf32>
    %cst_21 = arith.constant 0.000000e+00 : f32
    %46 = vector.broadcast %cst_21 : f32 to vector<32x128xf32>
    %47 = arith.maximumf %45, %46 : vector<32x128xf32>
    %c0_22 = arith.constant 0 : index
    %c0_23 = arith.constant 0 : index
    %48 = vector.load %arg6[%c0_22, %c0_23] : memref<32x1xf32, #tpu.memory_space<vmem>>, vector<32x1xf32>
    %c0_24 = arith.constant 0 : index
    %c0_25 = arith.constant 0 : index
    %49 = vector.load %arg7[%c0_24, %c0_25] : memref<1x1xf32, #tpu.memory_space<vmem>>, vector<1x1xf32>
    %cst_26 = arith.constant dense<0.000000e+00> : vector<128xf32>
    %50 = vector.multi_reduction <add>, %47, %cst_26 [0] : vector<32x128xf32> to vector<128xf32>
    %51 = vector.shape_cast %50 : vector<128xf32> to vector<1x128xf32>
    %cst_27 = arith.constant 3.200000e+01 : f32
    %52 = vector.broadcast %cst_27 : f32 to vector<1x128xf32>
    %53 = arith.divf %51, %52 : vector<1x128xf32>
    %54 = vector.broadcast %53 : vector<1x128xf32> to vector<32x128xf32>
    %55 = arith.subf %47, %54 : vector<32x128xf32>
    %56 = arith.mulf %55, %55 : vector<32x128xf32>
    %cst_28 = arith.constant dense<0.000000e+00> : vector<128xf32>
    %57 = vector.multi_reduction <add>, %56, %cst_28 [0] : vector<32x128xf32> to vector<128xf32>
    %58 = vector.shape_cast %57 : vector<128xf32> to vector<1x128xf32>
    %cst_29 = arith.constant 3.200000e+01 : f32
    %59 = vector.broadcast %cst_29 : f32 to vector<1x128xf32>
    %60 = arith.divf %58, %59 : vector<1x128xf32>
    %cst_30 = arith.constant 9.99999974E-6 : f32
    %61 = vector.broadcast %cst_30 : f32 to vector<1x128xf32>
    %62 = arith.addf %60, %61 : vector<1x128xf32>
    %63 = math.rsqrt %62 : vector<1x128xf32>
    %64 = vector.broadcast %63 : vector<1x128xf32> to vector<32x128xf32>
    %65 = arith.mulf %55, %64 : vector<32x128xf32>
    %66 = vector.broadcast %48 : vector<32x1xf32> to vector<32x128xf32>
    %67 = arith.mulf %65, %66 : vector<32x128xf32>
    %cst_31 = arith.constant dense<0.000000e+00> : vector<128xf32>
    %68 = vector.multi_reduction <add>, %67, %cst_31 [0] : vector<32x128xf32> to vector<128xf32>
    %69 = vector.shape_cast %68 : vector<128xf32> to vector<1x128xf32>
    %70 = vector.broadcast %49 : vector<1x1xf32> to vector<1x128xf32>
    %71 = arith.addf %69, %70 : vector<1x128xf32>
    %cst_32 = arith.constant 0.000000e+00 : f32
    %72 = vector.broadcast %cst_32 : f32 to vector<1x128xf32>
    %73 = arith.maximumf %71, %72 : vector<1x128xf32>
    %c0_33 = arith.constant 0 : index
    %c0_34 = arith.constant 0 : index
    %74 = vector.load %arg8[%c0_33, %c0_34] : memref<1x128xf32, #tpu.memory_space<vmem>>, vector<1x128xf32>
    tpu.vector_store %arg8[%c0_33, %c0_34], %73 {strides = array<i32>} : memref<1x128xf32, #tpu.memory_space<vmem>>, vector<1x128xf32>,
    return
  }
  func.func @transform_0(%arg0: i32) -> (i32, i32) {
    %c0_i32 = arith.constant 0 : i32
    %c0_i32_0 = arith.constant 0 : i32
    return %arg0, %c0_i32 : i32, i32
  }
  func.func @transform_1(%arg0: i32) -> (i32, i32) {
    %c0_i32 = arith.constant 0 : i32
    %c0_i32_0 = arith.constant 0 : i32
    %c0_i32_1 = arith.constant 0 : i32
    return %c0_i32, %c0_i32_0 : i32, i32
  }
  func.func @transform_2(%arg0: i32) -> (i32, i32) {
    %c0_i32 = arith.constant 0 : i32
    %c0_i32_0 = arith.constant 0 : i32
    %c0_i32_1 = arith.constant 0 : i32
    return %c0_i32, %c0_i32_0 : i32, i32
  }
  func.func @transform_3(%arg0: i32) -> (i32, i32) {
    %c0_i32 = arith.constant 0 : i32
    %c0_i32_0 = arith.constant 0 : i32
    %c0_i32_1 = arith.constant 0 : i32
    return %c0_i32, %c0_i32_0 : i32, i32
  }
  func.func @transform_4(%arg0: i32) -> (i32, i32) {
    %c0_i32 = arith.constant 0 : i32
    %c0_i32_0 = arith.constant 0 : i32
    %c0_i32_1 = arith.constant 0 : i32
    return %c0_i32, %c0_i32_0 : i32, i32
  }
  func.func @transform_5(%arg0: i32) -> (i32, i32) {
    %c0_i32 = arith.constant 0 : i32
    %c0_i32_0 = arith.constant 0 : i32
    %c0_i32_1 = arith.constant 0 : i32
    return %c0_i32, %c0_i32_0 : i32, i32
  }
  func.func @transform_6(%arg0: i32) -> (i32, i32) {
    %c0_i32 = arith.constant 0 : i32
    %c0_i32_0 = arith.constant 0 : i32
    %c0_i32_1 = arith.constant 0 : i32
    return %c0_i32, %c0_i32_0 : i32, i32
  }
  func.func @transform_7(%arg0: i32) -> (i32, i32) {
    %c0_i32 = arith.constant 0 : i32
    %c0_i32_0 = arith.constant 0 : i32
    return %c0_i32, %arg0 : i32, i32
  }
}

</mosaic_0001>

<bundles_post_ra>
// kernel: fc_prediction_forward.1
= control target key start
LH: loop header
LB: loop body
LE: loop exit
PB: predicated region body
PF: predicated region fallthrough
CT: control target
= control target key end

     0   :  { %v921_v18 = vmov 32.0   ;;  %v922_v56 = vmov 0   ;;  %vm154_vm1 = vcmask 261120   ;;  %s1175_s0 = inlined_call_operand.vmem [shape: f32[128,32], index: 0, kind: input, shape index: {}]   ;;  %s1176_s2 = inlined_call_operand.vmem [shape: f32[32,1], index: 2, kind: input, shape index: {}]   ;;  %s1177_s1 = inlined_call_operand.vmem [shape: f32[32,32], index: 1, kind: input, shape index: {}]   ;;  %s1178_s4 = inlined_call_operand.vmem [shape: f32[32,1], index: 4, kind: input, shape index: {}]   ;;  %s1179_s5 = inlined_call_operand.vmem [shape: f32[32,1], index: 5, kind: input, shape index: {}]   ;;  %s1180_s6 = inlined_call_operand.<no memory space> [shape: f32[1,1], index: 6, kind: input, shape index: {}]   ;;  %s1181_s3 = inlined_call_operand.vmem [shape: f32[32,32], index: 3, kind: input, shape index: {}]   ;;  %s1182_s7 = inlined_call_operand.vmem [shape: f32[1,128], index: 7, kind: output, shape index: {}]  }
   0x1   :  { %v28_v0 = vld [vmem:[%s1175_s0] sm:$0xff]  ;;  %v29_v1 = vld [vmem:[%s1175_s0 + $0x8] sm:$0xff]  ;;  %v30_v2 = vld [vmem:[%s1175_s0 + $0x10] sm:$0xff]  ;;  %913 = vrcp.f32 %v921_v18  ;;  %910 = vset.pattern.permute.xlu1 %v922_v56  ;;  %911 = vset.pattern.permute.xlu2 %v922_v56 }
   0x2   :  { %44 = vxpose.xlu0.b32.start [1/16] (narrow) %v28_v0, 32  ;;  %v31_v3 = vld [vmem:[%s1175_s0 + $0x18] sm:$0xff]  ;;  %v32_v4 = vld [vmem:[%s1175_s0 + $0x20] sm:$0xff]  ;;  %v33_v5 = vld [vmem:[%s1175_s0 + $0x28] sm:$0xff] }
   0x3   :  { %v34_v6 = vld [vmem:[%s1175_s0 + $0x30] sm:$0xff]  ;;  %v35_v7 = vld [vmem:[%s1175_s0 + $0x38] sm:$0xff]  ;;  %v36_v8 = vld [vmem:[%s1175_s0 + $0x40] sm:$0xff] }
   0x4   :  { %v37_v9 = vld [vmem:[%s1175_s0 + $0x48] sm:$0xff]  ;;  %v38_v10 = vld [vmem:[%s1175_s0 + $0x50] sm:$0xff]  ;;  %v39_v11 = vld [vmem:[%s1175_s0 + $0x58] sm:$0xff] }
   0x5   :  { %v40_v12 = vld [vmem:[%s1175_s0 + $0x60] sm:$0xff]  ;;  %v41_v13 = vld [vmem:[%s1175_s0 + $0x68] sm:$0xff]  ;;  %v42_v14 = vld [vmem:[%s1175_s0 + $0x70] sm:$0xff] }
   0x6   :  { %v43_v15 = vld [vmem:[%s1175_s0 + $0x78] sm:$0xff]  ;;  %v80_v57 = vld [vmem:[%s1176_s2] sm:$0xff]  ;;  %v81_v0 = vld [vmem:[%s1176_s2 + $0x8] sm:$0xff] }
   0x7   :  { %v914_v20 = vpop.eup %913  ;;  %v76_v58 = vld [vmem:[%s1177_s1] sm:$0xff]  ;;  %136 = vperm.xlu1 %910, %v80_v57  }
   0x8   :  { %v94_v21 = vmul.f32 32.0, %v914_v20  ;;  %vm98_vm0 = vweird.f32 %v914_v20  ;;  %v156_v60 = vsel %vm154_vm1, %v76_v58, 0  ;;  %v12_v58 = vstv %s1180_s6 }
   0x9   :  { %v1022_v63 = vand.u32 4294901760, %v156_v60  ;;  %13 = vst [vmem:[#allocation2] sm:$0x1] %v12_v58 }
   0xa   :  { %45 = vxpose.xlu0.b32.cont [2/16] (narrow) %v29_v1, 32  ;;  %v95_v24 = vsub.f32 1.0, %v94_v21 }
   0xc   :  { %v96_v28 = vmul.f32 %v914_v20, %v95_v24 }
   0xe   :  { %v97_v31 = vadd.f32 %v914_v20, %v96_v28 }
   0xf   :  { %141 = vperm.xlu1 %910, %v81_v0   ;;  %v454_v0 = vld [vmem:[%s1178_s4 + $0x8] sm:$0xff] }
  0x10   :  { %v1011_v34 = vsel %vm98_vm0, %v914_v20, %v97_v31 }
  0x12   :  { %46 = vxpose.xlu0.b32.cont [3/16] (narrow) %v30_v2, 32  ;;  %v77_v2 = vld [vmem:[%s1177_s1 + $0x8] sm:$0xff] }
  0x1a   :  { %47 = vxpose.xlu0.b32.cont [4/16] (narrow) %v31_v3, 32 }
  0x22   :  { %48 = vxpose.xlu0.b32.cont [5/16] (narrow) %v32_v4, 32  ;;  %v1031_v4 = vsub.f32 %v156_v60, %v1022_v63  ;;  %v83_v60 = vld [vmem:[%s1176_s2 + $0x18] sm:$0xff] }
  0x2a   :  { %49 = vxpose.xlu0.b32.cont [6/16] (narrow) %v33_v5, 32  ;;  %v159_v5 = vsel %vm154_vm1, %v77_v2, 0  ;;  %v815_v2 = vld [vmem:[%s1179_s5 + $0x8] sm:$0xff] }
  0x32   :  { %50 = vxpose.xlu0.b32.cont [7/16] (narrow) %v34_v6, 32 }
  0x3a   :  { %51 = vxpose.xlu0.b32.cont [8/16] (narrow) %v35_v7, 32 }
  0x42   :  { %52 = vxpose.xlu0.b32.cont [9/16] (narrow) %v36_v8, 32  ;;  %v189_v8 = vand.u32 4294901760, %v1031_v4 }
  0x44   :  { %v190_v20 = vsub.f32 %v1031_v4, %v189_v8 }
  0x4a   :  { %53 = vxpose.xlu0.b32.cont [10/16] (narrow) %v37_v9, 32  ;;  %v1035_v9 = vand.u32 4294901760, %v159_v5 }
  0x4c   :  { %v1053_v21 = vsub.f32 %v159_v5, %v1035_v9 }
  0x4e   :  { %v197_v31 = vand.u32 4294901760, %v1053_v21 }
  0x52   :  { %54 = vxpose.xlu0.b32.cont [11/16] (narrow) %v38_v10, 32  ;;  %v453_v10 = vld [vmem:[%s1178_s4] sm:$0xff] }
  0x53   :  { %502 = vperm.xlu1 %910, %v453_v10  }
  0x5a   :  { %55 = vxpose.xlu0.b32.cont [12/16] (narrow) %v39_v11, 32 }
  0x62   :  { %56 = vxpose.xlu0.b32.cont [13/16] (narrow) %v40_v12, 32 }
  0x6a   :  { %57 = vxpose.xlu0.b32.cont [14/16] (narrow) %v41_v13, 32 }
  0x72   :  { %58 = vxpose.xlu0.b32.cont [15/16] (narrow) %v42_v14, 32 }
  0x7a   :  { %59 = vxpose.xlu0.b32.end [16/16] (narrow) %v43_v15, 32  ;;  %v78_v15 = vld [vmem:[%s1177_s1 + $0x10] sm:$0xff] }
  0xa6   :  { %v60_v16 = vpop.trf.xlu0 }
  0xae   :  { %v61_v17 = vpop.trf.xlu0 }
  0xaf   :  { %v84_v22 = vadd.f32 %v61_v17, %v60_v16 }
  0xb6   :  { %v62_v19 = vpop.trf.xlu0 }
  0xb7   :  { %v85_v23 = vadd.f32 %v84_v22, %v62_v19 }
  0xbe   :  { %v63_v25 = vpop.trf.xlu0 }
  0xbf   :  { %v86_v26 = vadd.f32 %v85_v23, %v63_v25 }
  0xc1   :  { %v87_v27 = vrot.slane %v86_v26, 4 }
  0xc3   :  { %v88_v29 = vadd.f32 %v87_v27, %v86_v26 }
  0xc5   :  { %v89_v30 = vrot.slane %v88_v29, 2 }
  0xc7   :  { %v90_v32 = vadd.f32 %v89_v30, %v88_v29  ;;  %v191_v30 = vand.u32 4294901760, %v190_v20 }
  0xc9   :  { %v91_v33 = vrot.slane %v90_v32, 1 }
  0xcb   :  { %v92_v35 = vadd.f32 %v91_v33, %v90_v32  ;;  %v455_v33 = vld [vmem:[%s1178_s4 + $0x10] sm:$0xff] }
  0xcc   :  { %512 = vperm.xlu1 %910, %v455_v33  }
  0xcd   :  { %v100_v36 = vmul.f32 %v1011_v34, %v92_v35 }
  0xcf   :  { %v101_v37 = vsub.f32 %v60_v16, %v100_v36  ;;  %v102_v38 = vsub.f32 %v61_v17, %v100_v36  ;;  %v103_v39 = vsub.f32 %v62_v19, %v100_v36  ;;  %v104_v40 = vsub.f32 %v63_v25, %v100_v36 }
  0xd0   :  { %v162_v25 = vsel %vm154_vm1, %v78_v15, 0 }
  0xd1   :  { %v105_v41 = vmul.f32 %v101_v37, %v101_v37  ;;  %v106_v42 = vmul.f32 %v102_v38, %v102_v38  ;;  %v107_v43 = vmul.f32 %v103_v39, %v103_v39  ;;  %v108_v45 = vmul.f32 %v104_v40, %v104_v40 }
  0xd2   :  { %v1065_v32 = vand.u32 4294901760, %v162_v25 }
  0xd3   :  { %v109_v44 = vadd.f32 %v106_v42, %v105_v41  ;;  %v198_v41 = vsub.f32 %v1053_v21, %v197_v31 }
  0xd4   :  { %v204_v42 = vsub.f32 %v162_v25, %v1065_v32 }
  0xd5   :  { %v110_v46 = vadd.f32 %v109_v44, %v107_v43 }
  0xd7   :  { %v111_v47 = vadd.f32 %v110_v46, %v108_v45 }
  0xd9   :  { %v112_v48 = vrot.slane %v111_v47, 4 }
  0xdb   :  { %v113_v49 = vadd.f32 %v112_v48, %v111_v47  ;;  %v814_v47 = vld [vmem:[%s1179_s5] sm:$0xff]  ;;  %v199_v48 = vand.u32 4294901760, %v198_v41 }
  0xdc   :  { %864 = vperm.xlu1 %910, %v814_v47  }
  0xdd   :  { %v114_v50 = vrot.slane %v113_v49, 2 }
  0xdf   :  { %v115_v51 = vadd.f32 %v114_v50, %v113_v49  ;;  %v205_v49 = vand.u32 4294901760, %v204_v42 }
  0xe1   :  { %v116_v52 = vrot.slane %v115_v51, 1  ;;  %912 = vset.pattern.permute.xlu0 %v922_v56 }
  0xe3   :  { %v117_v53 = vadd.f32 %v116_v52, %v115_v51  ;;  %v206_v52 = vsub.f32 %v204_v42, %v205_v49 }
  0xe5   :  { %v118_v54 = vmul.f32 %v117_v53, %v1011_v34  ;;  %v207_v56 = vand.u32 4294901760, %v206_v52 }
  0xe7   :  { %v119_v55 = vadd.f32 1e-05, %v118_v54  ;;  %v82_v54 = vld [vmem:[%s1176_s2 + $0x10] sm:$0xff] }
  0xe8   :  { %146 = vperm.xlu2 %911, %v82_v54  }
  0xe9   :  { %915 = vrsqrt.f32 %v119_v55  ;;  %vm126_vm3 = vweird.f32 %v119_v55 }
  0xef   :  { %v916_v59 = vpop.eup %915 }
  0xf0   :  { %v121_v61 = vmul.f32 %v916_v59, %v119_v55  ;;  %vm127_vm2 = vweird.f32 %v916_v59  ;;  %v816_v55 = vld [vmem:[%s1179_s5 + $0x10] sm:$0xff]  ;;  %151 = vperm.xlu2 %911, %v83_v60  }
  0xf1   :  { %vm128_vm4 = vmor %vm126_vm3, %vm127_vm2  ;;  %874 = vperm.xlu1 %910, %v816_v55  }
  0xf2   :  { %v122_v62 = vmul.f32 %v916_v59, %v121_v61 }
  0xf4   :  { %v123_v1 = vmul.f32 0.5, %v122_v62  ;;  %v818_v62 = vld [vmem:[#allocation2] sm:$0x1] }
  0xf6   :  { %v124_v3 = vsub.f32 1.5, %v123_v1  ;;  %v456_v1 = vld [vmem:[%s1178_s4 + $0x18] sm:$0xff] }
  0xf8   :  { %v125_v6 = vmul.f32 %v916_v59, %v124_v3  ;;  %507 = vperm.xlu2 %911, %v454_v0   ;;  %v817_v3 = vld [vmem:[%s1179_s5 + $0x18] sm:$0xff] }
  0xf9   :  { %897 = vperm.xlu1 %910, %v818_v62  }
  0xfa   :  { %v129_v7 = vsel %vm128_vm4, %v916_v59, %v125_v6 }
  0xfb   :  { %v133_v11 = vmul.f32 %v129_v7, %v104_v40  ;;  %v132_v12 = vmul.f32 %v129_v7, %v103_v39  ;;  %v131_v13 = vmul.f32 %v129_v7, %v102_v38  ;;  %v130_v14 = vmul.f32 %v129_v7, %v101_v37  ;;  %v79_v38 = vld [vmem:[%s1177_s1 + $0x18] sm:$0xff] }
  0xfc   :  { %v165_v45 = vsel %vm154_vm1, %v79_v38, 0 }
  0xfd   :  { %v1043_v16 = vand.u32 4294901760, %v133_v11  ;;  %v1045_v17 = vand.u32 4294901760, %v132_v12  ;;  %v1047_v18 = vand.u32 4294901760, %v131_v13  ;;  %v1049_v19 = vand.u32 4294901760, %v130_v14 }
  0xfe   :  { %v211_v50 = vand.u32 4294901760, %v165_v45 }
  0xff   :  { %180 = vmatpush.msra.mxu0 %v1043_v16  ;;  %331 = vmatpush.msra.mxu3 %v1043_v16  ;;  %v233_v22 = vsub.f32 %v133_v11, %v1043_v16  ;;  %v239_v23 = vsub.f32 %v132_v12, %v1045_v17  ;;  %v245_v24 = vsub.f32 %v131_v13, %v1047_v18  ;;  %v137_v13 = vpop.permute.xlu1 %136 }
 0x100   :  { %v251_v26 = vsub.f32 %v130_v14, %v1049_v19  ;;  %v212_v53 = vsub.f32 %v165_v45, %v211_v50  ;;  %517 = vperm.xlu2 %911, %v456_v1  }
 0x101   :  { %182 = vmatpush.msra.mxu0 %v1045_v17  ;;  %287 = vmatpush.msra.mxu2 %v233_v22  ;;  %v234_v27 = vand.u32 4294901760, %v233_v22  ;;  %v240_v28 = vand.u32 4294901760, %v239_v23  ;;  %v246_v29 = vand.u32 4294901760, %v245_v24 }
 0x102   :  { %333 = vmatpush.msra.mxu3 %v1045_v17  ;;  %v252_v37 = vand.u32 4294901760, %v251_v26  ;;  %v213_v57 = vand.u32 4294901760, %v212_v53 }
 0x103   :  { %184 = vmatpush.msra.mxu0 %v1047_v18  ;;  %290 = vmatpush.msra.mxu2 %v239_v23  ;;  %v235_v35 = vsub.f32 %v233_v22, %v234_v27  ;;  %v241_v36 = vsub.f32 %v239_v23, %v240_v28  ;;  %v247_v40 = vsub.f32 %v245_v24, %v246_v29 }
 0x104   :  { %335 = vmatpush.msra.mxu3 %v1047_v18  ;;  %v253_v44 = vsub.f32 %v251_v26, %v252_v37  ;;  %v214_v59 = vsub.f32 %v212_v53, %v213_v57 }
 0x105   :  { %186 = vmatpush.msra.mxu0 %v1049_v19  ;;  %293 = vmatpush.msra.mxu2 %v245_v24  ;;  %v236_v39 = vand.u32 4294901760, %v235_v35  ;;  %v242_v43 = vand.u32 4294901760, %v241_v36  ;;  %v248_v46 = vand.u32 4294901760, %v247_v40 }
 0x106   :  { %337 = vmatpush.msra.mxu3 %v1049_v19  ;;  %192 = vmatmul.f32.vlgmr.msra.gmra.mxu0 %v191_v30  ;;  %v254_v51 = vand.u32 4294901760, %v253_v44  ;;  %v215_v61 = vand.u32 4294901760, %v214_v59 }
 0x107   :  { %378 = vmatpush.msrb.mxu0 %v234_v27  ;;  %237 = vmatpush.msra.mxu1 %v236_v39 }
 0x108   :  { %296 = vmatpush.msra.mxu2 %v251_v26  ;;  %341 = vmatmul.f32.vlgmr.msra.gmra.mxu3 %v189_v8 }
 0x109   :  { %382 = vmatpush.msrb.mxu0 %v240_v28  ;;  %243 = vmatpush.msra.mxu1 %v242_v43 }
 0x10a   :  { %299 = vmatmul.f32.vlgmr.msra.gmra.mxu2 %v1031_v4  ;;  %869 = vperm.xlu2 %911, %v815_v2  }
 0x10b   :  { %386 = vmatpush.msrb.mxu0 %v246_v29  ;;  %249 = vmatpush.msra.mxu1 %v248_v46 }
 0x10d   :  { %390 = vmatpush.msrb.mxu0 %v252_v37  ;;  %255 = vmatpush.msra.mxu1 %v254_v51 }
 0x10e   :  { %200 = vmatmul.f32.gmra.mxu0 %v199_v48  ;;  %257 = vmatmul.f32.vlgmr.msra.gmra.mxu1 %v1022_v63 }
 0x10f   :  { %421 = vmatpush.msrb.mxu1 %v1043_v16 }
 0x110   :  { %347 = vmatmul.f32.gmra.mxu3 %v197_v31 }
 0x111   :  { %423 = vmatpush.msrb.mxu1 %v1045_v17 }
 0x112   :  { %304 = vmatmul.f32.gmra.mxu2 %v1053_v21  ;;  %879 = vperm.xlu2 %911, %v817_v3  }
 0x113   :  { %425 = vmatpush.msrb.mxu1 %v1047_v18  ;;  %v142_v18 = vpop.permute.xlu1 %141 }
 0x115   :  { %427 = vmatpush.msrb.mxu1 %v1049_v19 }
 0x116   :  { %208 = vmatmul.f32.gmra.mxu0 %v207_v56  ;;  %261 = vmatmul.f32.gmra.mxu1 %v1035_v9 }
 0x118   :  { %353 = vmatmul.f32.gmra.mxu3 %v205_v49 }
 0x11a   :  { %309 = vmatmul.f32.gmra.mxu2 %v204_v42 }
 0x11e   :  { %216 = vmatmul.f32.gmra.mxu0 %v215_v61  ;;  %265 = vmatmul.f32.gmra.mxu1 %v1065_v32 }
 0x120   :  { %359 = vmatmul.f32.gmra.mxu3 %v213_v57 }
 0x122   :  { %314 = vmatmul.f32.gmra.mxu2 %v212_v53 }
 0x126   :  { %269 = vmatmul.f32.gmra.mxu1 %v211_v50  ;;  %392 = vmatmul.f32.vlgmr.msrb.gmra.mxu0 %v1022_v63 }
 0x12e   :  { %396 = vmatmul.f32.gmra.mxu0 %v1035_v9  ;;  %429 = vmatmul.f32.vlgmr.msrb.gmra.mxu1 %v1022_v63 }
 0x136   :  { %400 = vmatmul.f32.gmra.mxu0 %v1065_v32  ;;  %433 = vmatmul.f32.gmra.mxu1 %v1035_v9 }
 0x13e   :  { %404 = vmatmul.f32.gmra.mxu0 %v211_v50  ;;  %437 = vmatmul.f32.gmra.mxu1 %v1065_v32 }
 0x142   :  { %v147_v17 = vpop.permute.xlu2 %146 }
 0x146   :  { %441 = vmatmul.f32.gmra.mxu1 %v211_v50 }
 0x14a   :  { %v152_v27 = vpop.permute.xlu2 %151 }
 0x183   :  { %v193_v4 = vpop.f32.mrf.mxu0 }
 0x184   :  { %v194_v22 = vadd.f32 %v193_v4, %v137_v13 }
 0x18b   :  { %v201_v5 = vpop.f32.mrf.mxu0  ;;  %v258_v6 = vpop.f32.mrf.mxu1 }
 0x18c   :  { %v342_v12 = vpop.f32.mrf.mxu3  ;;  %v202_v21 = vadd.f32 %v201_v5, %v142_v18  ;;  %v259_v26 = vadd.f32 %v258_v6, %v194_v22 }
 0x18d   :  { %v300_v63 = vpop.f32.mrf.mxu2 }
 0x18e   :  { %v301_v35 = vadd.f32 %v300_v63, %v259_v26 }
 0x190   :  { %v343_v40 = vadd.f32 %v342_v12, %v301_v35 }
 0x193   :  { %v209_v7 = vpop.f32.mrf.mxu0  ;;  %v262_v8 = vpop.f32.mrf.mxu1 }
 0x194   :  { %v348_v9 = vpop.f32.mrf.mxu3  ;;  %v210_v23 = vadd.f32 %v209_v7, %v147_v17  ;;  %v263_v25 = vadd.f32 %v262_v8, %v202_v21 }
 0x195   :  { %v305_v16 = vpop.f32.mrf.mxu2 }
 0x196   :  { %v306_v31 = vadd.f32 %v305_v16, %v263_v25  ;;  %v449_v25 = vld [vmem:[%s1181_s3] sm:$0xff] }
 0x198   :  { %v349_v37 = vadd.f32 %v348_v9, %v306_v31 }
 0x19b   :  { %v217_v10 = vpop.f32.mrf.mxu0  ;;  %v266_v11 = vpop.f32.mrf.mxu1 }
 0x19c   :  { %v267_v28 = vadd.f32 %v266_v11, %v210_v23  ;;  %v354_v29 = vpop.f32.mrf.mxu3  ;;  %v218_v32 = vadd.f32 %v217_v10, %v152_v27  ;;  %v521_v27 = vsel %vm154_vm1, %v449_v25, 0 }
 0x19d   :  { %v310_v24 = vpop.f32.mrf.mxu2 }
 0x19e   :  { %v311_v36 = vadd.f32 %v310_v24, %v267_v28 }
 0x1a0   :  { %v355_v41 = vadd.f32 %v354_v29, %v311_v36 }
 0x1a3   :  { %v270_v14 = vpop.f32.mrf.mxu1  ;;  %v393_v15 = vpop.f32.mrf.mxu0 }
 0x1a4   :  { %v271_v38 = vadd.f32 %v270_v14, %v218_v32  ;;  %v394_v44 = vadd.f32 %v393_v15, %v343_v40  ;;  %v360_v48 = vpop.f32.mrf.mxu3  ;;  %v450_v32 = vld [vmem:[%s1181_s3 + $0x8] sm:$0xff] }
 0x1a5   :  { %v315_v39 = vpop.f32.mrf.mxu2  ;;  %v524_v36 = vsel %vm154_vm1, %v450_v32, 0 }
 0x1a6   :  { %v316_v45 = vadd.f32 %v315_v39, %v271_v38  ;;  %v1135_v40 = vand.u32 4294901760, %v524_v36 }
 0x1a8   :  { %v361_v52 = vadd.f32 %v360_v48, %v316_v45  ;;  %v451_v45 = vld [vmem:[%s1181_s3 + $0x10] sm:$0xff] }
 0x1ab   :  { %v397_v19 = vpop.f32.mrf.mxu0  ;;  %v430_v20 = vpop.f32.mrf.mxu1 }
 0x1ac   :  { %v398_v42 = vadd.f32 %v397_v19, %v349_v37  ;;  %v431_v49 = vadd.f32 %v430_v20, %v394_v44 }
 0x1ae   :  { %v445_v54 = vmax.f32 %v431_v49, 0.0 }
 0x1b3   :  { %v434_v30 = vpop.f32.mrf.mxu1  ;;  %v401_v33 = vpop.f32.mrf.mxu0 }
 0x1b4   :  { %v402_v46 = vadd.f32 %v401_v33, %v355_v41  ;;  %v435_v47 = vadd.f32 %v434_v30, %v398_v42  ;;  %v1128_v30 = vand.u32 4294901760, %v521_v27 }
 0x1b6   :  { %v446_v53 = vmax.f32 %v435_v47, 0.0  ;;  %v553_v35 = vsub.f32 %v521_v27, %v1128_v30 }
 0x1b8   :  { %v457_v58 = vadd.f32 %v446_v53, %v445_v54  ;;  %v554_v39 = vand.u32 4294901760, %v553_v35 }
 0x1bb   :  { %v438_v43 = vpop.f32.mrf.mxu1  ;;  %v405_v51 = vpop.f32.mrf.mxu0 }
 0x1bc   :  { %v439_v50 = vadd.f32 %v438_v43, %v402_v46  ;;  %v406_v55 = vadd.f32 %v405_v51, %v361_v52  ;;  %v561_v51 = vsub.f32 %v524_v36, %v1135_v40  ;;  %v508_v36 = vpop.permute.xlu2 %507 }
 0x1be   :  { %v447_v56 = vmax.f32 %v439_v50, 0.0  ;;  %v555_v50 = vsub.f32 %v553_v35, %v554_v39 }
 0x1c0   :  { %v458_v60 = vadd.f32 %v457_v58, %v447_v56 }
 0x1c3   :  { %v442_v57 = vpop.f32.mrf.mxu1 }
 0x1c4   :  { %v443_v59 = vadd.f32 %v442_v57, %v406_v55  ;;  %v527_v55 = vsel %vm154_vm1, %v451_v45, 0 }
 0x1c6   :  { %v448_v61 = vmax.f32 %v443_v59, 0.0 }
 0x1c8   :  { %v459_v62 = vadd.f32 %v458_v60, %v448_v61  ;;  %v556_v60 = vand.u32 4294901760, %v555_v50  ;;  %v518_v50 = vpop.permute.xlu2 %517 }
 0x1ca   :  { %v460_v0 = vrot.slane %v459_v62, 4 }
 0x1cc   :  { %v461_v1 = vadd.f32 %v460_v0, %v459_v62  ;;  %v1148_v62 = vand.u32 4294901760, %v527_v55 }
 0x1ce   :  { %v462_v2 = vrot.slane %v461_v1, 2 }
 0x1d0   :  { %v463_v3 = vadd.f32 %v462_v2, %v461_v1 }
 0x1d2   :  { %v464_v4 = vrot.slane %v463_v3, 1 }
 0x1d4   :  { %v465_v5 = vadd.f32 %v464_v4, %v463_v3  ;;  %v452_v3 = vld [vmem:[%s1181_s3 + $0x18] sm:$0xff] }
 0x1d6   :  { %v466_v6 = vmul.f32 %v465_v5, %v1011_v34 }
 0x1d8   :  { %v467_v7 = vsub.f32 %v445_v54, %v466_v6  ;;  %v468_v8 = vsub.f32 %v446_v53, %v466_v6  ;;  %v469_v63 = vsub.f32 %v447_v56, %v466_v6  ;;  %v470_v10 = vsub.f32 %v448_v61, %v466_v6 }
 0x1d9   :  { %v562_v61 = vand.u32 4294901760, %v561_v51 }
 0x1da   :  { %v471_v11 = vmul.f32 %v467_v7, %v467_v7  ;;  %v472_v12 = vmul.f32 %v468_v8, %v468_v8  ;;  %v473_v13 = vmul.f32 %v469_v63, %v469_v63  ;;  %v474_v15 = vmul.f32 %v470_v10, %v470_v10 }
 0x1db   :  { %v563_v6 = vsub.f32 %v561_v51, %v562_v61 }
 0x1dc   :  { %v475_v14 = vadd.f32 %v472_v12, %v471_v11 }
 0x1dd   :  { %v564_v12 = vand.u32 4294901760, %v563_v6 }
 0x1de   :  { %v476_v16 = vadd.f32 %v475_v14, %v473_v13 }
 0x1e0   :  { %v477_v17 = vadd.f32 %v476_v16, %v474_v15 }
 0x1e2   :  { %v478_v9 = vrot.slane %v477_v17, 4 }
 0x1e4   :  { %v479_v18 = vadd.f32 %v478_v9, %v477_v17 }
 0x1e6   :  { %v480_v19 = vrot.slane %v479_v18, 2 }
 0x1e8   :  { %v481_v20 = vadd.f32 %v480_v19, %v479_v18 }
 0x1ea   :  { %v482_v21 = vrot.slane %v481_v20, 1 }
 0x1ec   :  { %v483_v22 = vadd.f32 %v482_v21, %v481_v20 }
 0x1ee   :  { %v484_v23 = vmul.f32 %v483_v22, %v1011_v34 }
 0x1f0   :  { %v485_v24 = vadd.f32 1e-05, %v484_v23 }
 0x1f2   :  { %917 = vrsqrt.f32 %v485_v24  ;;  %vm492_vm6 = vweird.f32 %v485_v24 }
 0x1f8   :  { %v918_v26 = vpop.eup %917 }
 0x1f9   :  { %v487_v28 = vmul.f32 %v918_v26, %v485_v24  ;;  %vm493_vm5 = vweird.f32 %v918_v26 }
 0x1fa   :  { %vm494_vm7 = vmor %vm492_vm6, %vm493_vm5 }
 0x1fb   :  { %v488_v29 = vmul.f32 %v918_v26, %v487_v28 }
 0x1fd   :  { %v489_v31 = vmul.f32 0.5, %v488_v29 }
 0x1ff   :  { %v490_v33 = vsub.f32 1.5, %v489_v31 }
 0x201   :  { %v491_v37 = vmul.f32 %v918_v26, %v490_v33 }
 0x203   :  { %v495_v38 = vsel %vm494_vm7, %v918_v26, %v491_v37 }
 0x204   :  { %v499_v41 = vmul.f32 %v495_v38, %v470_v10  ;;  %v498_v42 = vmul.f32 %v495_v38, %v469_v63  ;;  %v497_v43 = vmul.f32 %v495_v38, %v468_v8  ;;  %v496_v44 = vmul.f32 %v495_v38, %v467_v7 }
 0x205   :  { %v569_v7 = vsub.f32 %v527_v55, %v1148_v62  ;;  %v530_v10 = vsel %vm154_vm1, %v452_v3, 0 }
 0x206   :  { %v544_v46 = vand.u32 4294901760, %v499_v41  ;;  %v546_v47 = vand.u32 4294901760, %v498_v42  ;;  %v1140_v48 = vand.u32 4294901760, %v497_v43  ;;  %v1142_v49 = vand.u32 4294901760, %v496_v44 }
 0x207   :  { %v570_v13 = vand.u32 4294901760, %v569_v7  ;;  %v576_v14 = vand.u32 4294901760, %v530_v10 }
 0x208   :  { %v598_v52 = vsub.f32 %v499_v41, %v544_v46  ;;  %545 = vmatpush.msrb.mxu2 %v544_v46  ;;  %696 = vmatpush.msra.mxu1 %v544_v46  ;;  %v604_v53 = vsub.f32 %v498_v42, %v546_v47  ;;  %v610_v54 = vsub.f32 %v497_v43, %v1140_v48 }
 0x209   :  { %v616_v56 = vsub.f32 %v496_v44, %v1142_v49  ;;  %v571_v16 = vsub.f32 %v569_v7, %v570_v13  ;;  %v577_v17 = vsub.f32 %v530_v10, %v576_v14 }
 0x20a   :  { %547 = vmatpush.msrb.mxu2 %v546_v47  ;;  %652 = vmatpush.msra.mxu0 %v598_v52  ;;  %v599_v57 = vand.u32 4294901760, %v598_v52  ;;  %v605_v58 = vand.u32 4294901760, %v604_v53  ;;  %v611_v59 = vand.u32 4294901760, %v610_v54 }
 0x20b   :  { %698 = vmatpush.msra.mxu1 %v546_v47  ;;  %v617_v2 = vand.u32 4294901760, %v616_v56  ;;  %v572_v9 = vand.u32 4294901760, %v571_v16  ;;  %v578_v18 = vand.u32 4294901760, %v577_v17 }
 0x20c   :  { %549 = vmatpush.msrb.mxu2 %v1140_v48  ;;  %655 = vmatpush.msra.mxu0 %v604_v53  ;;  %v600_v0 = vsub.f32 %v598_v52, %v599_v57  ;;  %v606_v1 = vsub.f32 %v604_v53, %v605_v58  ;;  %v612_v5 = vsub.f32 %v610_v54, %v611_v59 }
 0x20d   :  { %700 = vmatpush.msra.mxu1 %v1140_v48  ;;  %v618_v63 = vsub.f32 %v616_v56, %v617_v2  ;;  %v579_v19 = vsub.f32 %v577_v17, %v578_v18 }
 0x20e   :  { %551 = vmatpush.msrb.mxu2 %v1142_v49  ;;  %658 = vmatpush.msra.mxu0 %v610_v54  ;;  %v601_v4 = vand.u32 4294901760, %v600_v0  ;;  %v607_v8 = vand.u32 4294901760, %v606_v1  ;;  %v613_v11 = vand.u32 4294901760, %v612_v5 }
 0x20f   :  { %702 = vmatpush.msra.mxu1 %v1142_v49  ;;  %557 = vmatmul.f32.vlgmr.msrb.gmra.mxu2 %v556_v60  ;;  %v619_v15 = vand.u32 4294901760, %v618_v63  ;;  %v580_v20 = vand.u32 4294901760, %v579_v19 }
 0x210   :  { %743 = vmatpush.msra.mxu2 %v599_v57  ;;  %602 = vmatpush.msrb.mxu3 %v601_v4 }
 0x211   :  { %661 = vmatpush.msra.mxu0 %v616_v56  ;;  %706 = vmatmul.f32.vlgmr.msra.gmra.mxu1 %v554_v39 }
 0x212   :  { %747 = vmatpush.msra.mxu2 %v605_v58  ;;  %608 = vmatpush.msrb.mxu3 %v607_v8 }
 0x213   :  { %664 = vmatmul.f32.vlgmr.msra.gmra.mxu0 %v553_v35 }
 0x214   :  { %751 = vmatpush.msra.mxu2 %v611_v59  ;;  %614 = vmatpush.msrb.mxu3 %v613_v11 }
 0x216   :  { %755 = vmatpush.msra.mxu2 %v617_v2  ;;  %620 = vmatpush.msrb.mxu3 %v619_v15 }
 0x217   :  { %565 = vmatmul.f32.gmra.mxu2 %v564_v12  ;;  %622 = vmatmul.f32.vlgmr.msrb.gmra.mxu3 %v1128_v30 }
 0x218   :  { %786 = vmatpush.msra.mxu3 %v544_v46 }
 0x219   :  { %712 = vmatmul.f32.gmra.mxu1 %v562_v61 }
 0x21a   :  { %788 = vmatpush.msra.mxu3 %v546_v47 }
 0x21b   :  { %669 = vmatmul.f32.gmra.mxu0 %v561_v51 }
 0x21c   :  { %790 = vmatpush.msra.mxu3 %v1140_v48 }
 0x21e   :  { %792 = vmatpush.msra.mxu3 %v1142_v49 }
 0x21f   :  { %573 = vmatmul.f32.gmra.mxu2 %v572_v9  ;;  %626 = vmatmul.f32.gmra.mxu3 %v1135_v40 }
 0x221   :  { %718 = vmatmul.f32.gmra.mxu1 %v570_v13 }
 0x223   :  { %674 = vmatmul.f32.gmra.mxu0 %v569_v7 }
 0x227   :  { %581 = vmatmul.f32.gmra.mxu2 %v580_v20  ;;  %630 = vmatmul.f32.gmra.mxu3 %v1148_v62 }
 0x229   :  { %724 = vmatmul.f32.gmra.mxu1 %v578_v18 }
 0x22b   :  { %679 = vmatmul.f32.gmra.mxu0 %v577_v17 }
 0x22f   :  { %634 = vmatmul.f32.gmra.mxu3 %v576_v14  ;;  %757 = vmatmul.f32.vlgmr.msra.gmra.mxu2 %v1128_v30 }
 0x237   :  { %761 = vmatmul.f32.gmra.mxu2 %v1135_v40  ;;  %794 = vmatmul.f32.vlgmr.msra.gmra.mxu3 %v1128_v30  ;;  %v503_v30 = vpop.permute.xlu1 %502 }
 0x23f   :  { %765 = vmatmul.f32.gmra.mxu2 %v1148_v62  ;;  %798 = vmatmul.f32.gmra.mxu3 %v1135_v40  ;;  %v513_v40 = vpop.permute.xlu1 %512 }
 0x247   :  { %769 = vmatmul.f32.gmra.mxu2 %v576_v14  ;;  %802 = vmatmul.f32.gmra.mxu3 %v1148_v62 }
 0x24f   :  { %806 = vmatmul.f32.gmra.mxu3 %v576_v14 }
 0x28e   :  { %v707_v29 = vpop.f32.mrf.mxu1 }
 0x290   :  { %v665_v26 = vpop.f32.mrf.mxu0 }
 0x292   :  { %v558_v21 = vpop.f32.mrf.mxu2 }
 0x293   :  { %v559_v42 = vadd.f32 %v558_v21, %v503_v30 }
 0x296   :  { %v713_v35 = vpop.f32.mrf.mxu1 }
 0x298   :  { %v670_v33 = vpop.f32.mrf.mxu0 }
 0x29a   :  { %v566_v22 = vpop.f32.mrf.mxu2  ;;  %v623_v23 = vpop.f32.mrf.mxu3 }
 0x29b   :  { %v567_v39 = vadd.f32 %v566_v22, %v508_v36  ;;  %v624_v45 = vadd.f32 %v623_v23, %v559_v42 }
 0x29d   :  { %v666_v52 = vadd.f32 %v665_v26, %v624_v45 }
 0x29e   :  { %v719_v47 = vpop.f32.mrf.mxu1 }
 0x29f   :  { %v708_v58 = vadd.f32 %v707_v29, %v666_v52 }
 0x2a0   :  { %v675_v41 = vpop.f32.mrf.mxu0 }
 0x2a2   :  { %v574_v24 = vpop.f32.mrf.mxu2  ;;  %v627_v25 = vpop.f32.mrf.mxu3 }
 0x2a3   :  { %v575_v43 = vadd.f32 %v574_v24, %v513_v40  ;;  %v628_v44 = vadd.f32 %v627_v25, %v567_v39 }
 0x2a5   :  { %v671_v49 = vadd.f32 %v670_v33, %v628_v44 }
 0x2a6   :  { %v725_v3 = vpop.f32.mrf.mxu1 }
 0x2a7   :  { %v714_v55 = vadd.f32 %v713_v35, %v671_v49  ;;  %v870_v49 = vpop.permute.xlu2 %869 }
 0x2a8   :  { %v680_v57 = vpop.f32.mrf.mxu0 }
 0x2aa   :  { %v582_v27 = vpop.f32.mrf.mxu2  ;;  %v631_v28 = vpop.f32.mrf.mxu3 }
 0x2ab   :  { %v632_v46 = vadd.f32 %v631_v28, %v575_v43  ;;  %v583_v53 = vadd.f32 %v582_v27, %v518_v50 }
 0x2ad   :  { %v676_v54 = vadd.f32 %v675_v41, %v632_v46 }
 0x2af   :  { %v720_v59 = vadd.f32 %v719_v47, %v676_v54  ;;  %v865_v47 = vpop.permute.xlu1 %864 }
 0x2b2   :  { %v635_v31 = vpop.f32.mrf.mxu3  ;;  %v758_v32 = vpop.f32.mrf.mxu2 }
 0x2b3   :  { %v636_v56 = vadd.f32 %v635_v31, %v583_v53  ;;  %v759_v62 = vadd.f32 %v758_v32, %v708_v58 }
 0x2b5   :  { %v681_v0 = vadd.f32 %v680_v57, %v636_v56 }
 0x2b7   :  { %v726_v7 = vadd.f32 %v725_v3, %v681_v0  ;;  %v875_v58 = vpop.permute.xlu1 %874 }
 0x2ba   :  { %v762_v37 = vpop.f32.mrf.mxu2  ;;  %v795_v38 = vpop.f32.mrf.mxu3 }
 0x2bb   :  { %v763_v60 = vadd.f32 %v762_v37, %v714_v55  ;;  %v796_v4 = vadd.f32 %v795_v38, %v759_v62 }
 0x2bd   :  { %v810_v63 = vmax.f32 %v796_v4, 0.0 }
 0x2c2   :  { %v799_v48 = vpop.f32.mrf.mxu3  ;;  %v766_v51 = vpop.f32.mrf.mxu2 }
 0x2c3   :  { %v767_v1 = vadd.f32 %v766_v51, %v720_v59  ;;  %v800_v2 = vadd.f32 %v799_v48, %v763_v60 }
 0x2c5   :  { %v811_v8 = vmax.f32 %v800_v2, 0.0 }
 0x2c7   :  { %v819_v13 = vadd.f32 %v811_v8, %v810_v63 }
 0x2ca   :  { %v803_v61 = vpop.f32.mrf.mxu3  ;;  %v770_v6 = vpop.f32.mrf.mxu2 }
 0x2cb   :  { %v804_v5 = vadd.f32 %v803_v61, %v767_v1  ;;  %v771_v10 = vadd.f32 %v770_v6, %v726_v7  ;;  %v880_v61 = vpop.permute.xlu2 %879  ;;  %v898_v6 = vpop.permute.xlu1 %897 }
 0x2cd   :  { %v812_v11 = vmax.f32 %v804_v5, 0.0 }
 0x2cf   :  { %v820_v15 = vadd.f32 %v819_v13, %v812_v11 }
 0x2d2   :  { %v807_v12 = vpop.f32.mrf.mxu3 }
 0x2d3   :  { %v808_v14 = vadd.f32 %v807_v12, %v771_v10 }
 0x2d5   :  { %v813_v16 = vmax.f32 %v808_v14, 0.0 }
 0x2d7   :  { %v821_v17 = vadd.f32 %v820_v15, %v813_v16 }
 0x2d9   :  { %v822_v9 = vrot.slane %v821_v17, 4 }
 0x2db   :  { %v823_v18 = vadd.f32 %v822_v9, %v821_v17 }
 0x2dd   :  { %v824_v19 = vrot.slane %v823_v18, 2 }
 0x2df   :  { %v825_v20 = vadd.f32 %v824_v19, %v823_v18 }
 0x2e1   :  { %v826_v21 = vrot.slane %v825_v20, 1 }
 0x2e3   :  { %v827_v22 = vadd.f32 %v826_v21, %v825_v20 }
 0x2e5   :  { %v828_v23 = vmul.f32 %v827_v22, %v1011_v34 }
 0x2e7   :  { %v829_v24 = vsub.f32 %v810_v63, %v828_v23  ;;  %v830_v25 = vsub.f32 %v811_v8, %v828_v23  ;;  %v831_v26 = vsub.f32 %v812_v11, %v828_v23  ;;  %v832_v27 = vsub.f32 %v813_v16, %v828_v23 }
 0x2e8   :  { %v900_v8 = vperm.slane %v898_v6, 0 }
 0x2e9   :  { %v833_v28 = vmul.f32 %v829_v24, %v829_v24  ;;  %v834_v29 = vmul.f32 %v830_v25, %v830_v25  ;;  %v835_v31 = vmul.f32 %v831_v26, %v831_v26  ;;  %v836_v30 = vmul.f32 %v832_v27, %v832_v27 }
 0x2eb   :  { %v837_v32 = vadd.f32 %v834_v29, %v833_v28 }
 0x2ed   :  { %v838_v33 = vadd.f32 %v837_v32, %v835_v31 }
 0x2ef   :  { %v839_v35 = vadd.f32 %v838_v33, %v836_v30 }
 0x2f1   :  { %v840_v36 = vrot.slane %v839_v35, 4 }
 0x2f3   :  { %v841_v37 = vadd.f32 %v840_v36, %v839_v35 }
 0x2f5   :  { %v842_v38 = vrot.slane %v841_v37, 2 }
 0x2f7   :  { %v843_v39 = vadd.f32 %v842_v38, %v841_v37 }
 0x2f9   :  { %v844_v40 = vrot.slane %v843_v39, 1 }
 0x2fb   :  { %v845_v41 = vadd.f32 %v844_v40, %v843_v39 }
 0x2fd   :  { %v846_v42 = vmul.f32 %v845_v41, %v1011_v34 }
 0x2ff   :  { %v847_v43 = vadd.f32 1e-05, %v846_v42 }
 0x301   :  { %919 = vrsqrt.f32 %v847_v43  ;;  %vm854_vm9 = vweird.f32 %v847_v43 }
 0x307   :  { %v920_v44 = vpop.eup %919 }
 0x308   :  { %v849_v45 = vmul.f32 %v920_v44, %v847_v43  ;;  %vm855_vm8 = vweird.f32 %v920_v44 }
 0x309   :  { %vm856_vm10 = vmor %vm854_vm9, %vm855_vm8 }
 0x30a   :  { %v850_v46 = vmul.f32 %v920_v44, %v849_v45 }
 0x30c   :  { %v851_v48 = vmul.f32 0.5, %v850_v46 }
 0x30e   :  { %v852_v50 = vsub.f32 1.5, %v851_v48 }
 0x310   :  { %v853_v51 = vmul.f32 %v920_v44, %v852_v50 }
 0x312   :  { %v857_v52 = vsel %vm856_vm10, %v920_v44, %v853_v51 }
 0x313   :  { %v858_v53 = vmul.f32 %v857_v52, %v829_v24  ;;  %v859_v54 = vmul.f32 %v857_v52, %v830_v25  ;;  %v860_v55 = vmul.f32 %v857_v52, %v831_v26  ;;  %v861_v56 = vmul.f32 %v857_v52, %v832_v27 }
 0x315   :  { %v882_v57 = vmul.f32 %v865_v47, %v858_v53  ;;  %v883_v34 = vmul.f32 %v870_v49, %v859_v54  ;;  %v884_v59 = vmul.f32 %v875_v58, %v860_v55  ;;  %v885_v62 = vmul.f32 %v880_v61, %v861_v56 }
 0x317   :  { %v886_v60 = vadd.f32 %v883_v34, %v882_v57 }
 0x319   :  { %v887_v0 = vadd.f32 %v886_v60, %v884_v59 }
 0x31b   :  { %v888_v1 = vadd.f32 %v887_v0, %v885_v62 }
 0x31d   :  { %v889_v2 = vrot.slane %v888_v1, 4 }
 0x31f   :  { %v890_v3 = vadd.f32 %v889_v2, %v888_v1 }
 0x321   :  { %v891_v4 = vrot.slane %v890_v3, 2 }
 0x323   :  { %v892_v5 = vadd.f32 %v891_v4, %v890_v3 }
 0x325   :  { %v893_v7 = vrot.slane %v892_v5, 1 }
 0x327   :  { %v894_v63 = vadd.f32 %v893_v7, %v892_v5 }
 0x329   :  { %v901_v10 = vadd.f32 %v900_v8, %v894_v63 }
 0x32b   :  { %v902_v11 = vmax.f32 %v901_v10, 0.0 }
 0x32d   :  { %903 = vst [vmem:[%s1182_s7] sm:$0x1] %v902_v11 }

// kernel: fc_prediction_forward.1
= control target key start
LH: loop header
LB: loop body
LE: loop exit
PB: predicated region body
PF: predicated region fallthrough
CT: control target
= control target key end

     0   :  { %v921_v18 = vmov 32.0   ;;  %v922_v56 = vmov 0   ;;  %vm154_vm1 = vcmask 261120   ;;  %s1175_s0 = inlined_call_operand.vmem [shape: f32[128,32], index: 0, kind: input, shape index: {}]   ;;  %s1176_s2 = inlined_call_operand.vmem [shape: f32[32,1], index: 2, kind: input, shape index: {}]   ;;  %s1177_s1 = inlined_call_operand.vmem [shape: f32[32,32], index: 1, kind: input, shape index: {}]   ;;  %s1178_s4 = inlined_call_operand.vmem [shape: f32[32,1], index: 4, kind: input, shape index: {}]   ;;  %s1179_s5 = inlined_call_operand.vmem [shape: f32[32,1], index: 5, kind: input, shape index: {}]   ;;  %s1180_s6 = inlined_call_operand.<no memory space> [shape: f32[1,1], index: 6, kind: input, shape index: {}]   ;;  %s1181_s3 = inlined_call_operand.vmem [shape: f32[32,32], index: 3, kind: input, shape index: {}]   ;;  %s1182_s7 = inlined_call_operand.vmem [shape: f32[1,128], index: 7, kind: output, shape index: {}]  }
   0x1   :  { %v28_v0 = vld [vmem:[%s1175_s0] sm:$0xff]  ;;  %v29_v1 = vld [vmem:[%s1175_s0 + $0x8] sm:$0xff]  ;;  %v30_v2 = vld [vmem:[%s1175_s0 + $0x10] sm:$0xff]  ;;  %913 = vrcp.f32 %v921_v18  ;;  %910 = vset.pattern.permute.xlu1 %v922_v56  ;;  %911 = vset.pattern.permute.xlu2 %v922_v56 }
   0x2   :  { %44 = vxpose.xlu0.b32.start [1/16] (narrow) %v28_v0, 32  ;;  %v31_v3 = vld [vmem:[%s1175_s0 + $0x18] sm:$0xff]  ;;  %v32_v4 = vld [vmem:[%s1175_s0 + $0x20] sm:$0xff]  ;;  %v33_v5 = vld [vmem:[%s1175_s0 + $0x28] sm:$0xff] }
   0x3   :  { %v34_v6 = vld [vmem:[%s1175_s0 + $0x30] sm:$0xff]  ;;  %v35_v7 = vld [vmem:[%s1175_s0 + $0x38] sm:$0xff]  ;;  %v36_v8 = vld [vmem:[%s1175_s0 + $0x40] sm:$0xff] }
   0x4   :  { %v37_v9 = vld [vmem:[%s1175_s0 + $0x48] sm:$0xff]  ;;  %v38_v10 = vld [vmem:[%s1175_s0 + $0x50] sm:$0xff]  ;;  %v39_v11 = vld [vmem:[%s1175_s0 + $0x58] sm:$0xff] }
   0x5   :  { %v40_v12 = vld [vmem:[%s1175_s0 + $0x60] sm:$0xff]  ;;  %v41_v13 = vld [vmem:[%s1175_s0 + $0x68] sm:$0xff]  ;;  %v42_v14 = vld [vmem:[%s1175_s0 + $0x70] sm:$0xff] }
   0x6   :  { %v43_v15 = vld [vmem:[%s1175_s0 + $0x78] sm:$0xff]  ;;  %v80_v57 = vld [vmem:[%s1176_s2] sm:$0xff]  ;;  %v81_v0 = vld [vmem:[%s1176_s2 + $0x8] sm:$0xff] }
   0x7   :  { %v914_v20 = vpop.eup %913  ;;  %v76_v58 = vld [vmem:[%s1177_s1] sm:$0xff]  ;;  %136 = vperm.xlu1 %910, %v80_v57  }
   0x8   :  { %v94_v21 = vmul.f32 32.0, %v914_v20  ;;  %vm98_vm0 = vweird.f32 %v914_v20  ;;  %v156_v60 = vsel %vm154_vm1, %v76_v58, 0  ;;  %v12_v58 = vstv %s1180_s6 }
   0x9   :  { %v1022_v63 = vand.u32 4294901760, %v156_v60  ;;  %13 = vst [vmem:[#allocation2] sm:$0x1] %v12_v58 }
   0xa   :  { %45 = vxpose.xlu0.b32.cont [2/16] (narrow) %v29_v1, 32  ;;  %v95_v24 = vsub.f32 1.0, %v94_v21 }
   0xc   :  { %v96_v28 = vmul.f32 %v914_v20, %v95_v24 }
   0xe   :  { %v97_v31 = vadd.f32 %v914_v20, %v96_v28 }
   0xf   :  { %141 = vperm.xlu1 %910, %v81_v0   ;;  %v454_v0 = vld [vmem:[%s1178_s4 + $0x8] sm:$0xff] }
  0x10   :  { %v1011_v34 = vsel %vm98_vm0, %v914_v20, %v97_v31 }
  0x12   :  { %46 = vxpose.xlu0.b32.cont [3/16] (narrow) %v30_v2, 32  ;;  %v77_v2 = vld [vmem:[%s1177_s1 + $0x8] sm:$0xff] }
  0x1a   :  { %47 = vxpose.xlu0.b32.cont [4/16] (narrow) %v31_v3, 32 }
  0x22   :  { %48 = vxpose.xlu0.b32.cont [5/16] (narrow) %v32_v4, 32  ;;  %v1031_v4 = vsub.f32 %v156_v60, %v1022_v63  ;;  %v83_v60 = vld [vmem:[%s1176_s2 + $0x18] sm:$0xff] }
  0x2a   :  { %49 = vxpose.xlu0.b32.cont [6/16] (narrow) %v33_v5, 32  ;;  %v159_v5 = vsel %vm154_vm1, %v77_v2, 0  ;;  %v815_v2 = vld [vmem:[%s1179_s5 + $0x8] sm:$0xff] }
  0x32   :  { %50 = vxpose.xlu0.b32.cont [7/16] (narrow) %v34_v6, 32 }
  0x3a   :  { %51 = vxpose.xlu0.b32.cont [8/16] (narrow) %v35_v7, 32 }
  0x42   :  { %52 = vxpose.xlu0.b32.cont [9/16] (narrow) %v36_v8, 32  ;;  %v189_v8 = vand.u32 4294901760, %v1031_v4 }
  0x44   :  { %v190_v20 = vsub.f32 %v1031_v4, %v189_v8 }
  0x4a   :  { %53 = vxpose.xlu0.b32.cont [10/16] (narrow) %v37_v9, 32  ;;  %v1035_v9 = vand.u32 4294901760, %v159_v5 }
  0x4c   :  { %v1053_v21 = vsub.f32 %v159_v5, %v1035_v9 }
  0x4e   :  { %v197_v31 = vand.u32 4294901760, %v1053_v21 }
  0x52   :  { %54 = vxpose.xlu0.b32.cont [11/16] (narrow) %v38_v10, 32  ;;  %v453_v10 = vld [vmem:[%s1178_s4] sm:$0xff] }
  0x53   :  { %502 = vperm.xlu1 %910, %v453_v10  }
  0x5a   :  { %55 = vxpose.xlu0.b32.cont [12/16] (narrow) %v39_v11, 32 }
  0x62   :  { %56 = vxpose.xlu0.b32.cont [13/16] (narrow) %v40_v12, 32 }
  0x6a   :  { %57 = vxpose.xlu0.b32.cont [14/16] (narrow) %v41_v13, 32 }
  0x72   :  { %58 = vxpose.xlu0.b32.cont [15/16] (narrow) %v42_v14, 32 }
  0x7a   :  { %59 = vxpose.xlu0.b32.end [16/16] (narrow) %v43_v15, 32  ;;  %v78_v15 = vld [vmem:[%s1177_s1 + $0x10] sm:$0xff] }
  0xa6   :  { %v60_v16 = vpop.trf.xlu0 }
  0xae   :  { %v61_v17 = vpop.trf.xlu0 }
  0xaf   :  { %v84_v22 = vadd.f32 %v61_v17, %v60_v16 }
  0xb6   :  { %v62_v19 = vpop.trf.xlu0 }
  0xb7   :  { %v85_v23 = vadd.f32 %v84_v22, %v62_v19 }
  0xbe   :  { %v63_v25 = vpop.trf.xlu0 }
  0xbf   :  { %v86_v26 = vadd.f32 %v85_v23, %v63_v25 }
  0xc1   :  { %v87_v27 = vrot.slane %v86_v26, 4 }
  0xc3   :  { %v88_v29 = vadd.f32 %v87_v27, %v86_v26 }
  0xc5   :  { %v89_v30 = vrot.slane %v88_v29, 2 }
  0xc7   :  { %v90_v32 = vadd.f32 %v89_v30, %v88_v29  ;;  %v191_v30 = vand.u32 4294901760, %v190_v20 }
  0xc9   :  { %v91_v33 = vrot.slane %v90_v32, 1 }
  0xcb   :  { %v92_v35 = vadd.f32 %v91_v33, %v90_v32  ;;  %v455_v33 = vld [vmem:[%s1178_s4 + $0x10] sm:$0xff] }
  0xcc   :  { %512 = vperm.xlu1 %910, %v455_v33  }
  0xcd   :  { %v100_v36 = vmul.f32 %v1011_v34, %v92_v35 }
  0xcf   :  { %v101_v37 = vsub.f32 %v60_v16, %v100_v36  ;;  %v102_v38 = vsub.f32 %v61_v17, %v100_v36  ;;  %v103_v39 = vsub.f32 %v62_v19, %v100_v36  ;;  %v104_v40 = vsub.f32 %v63_v25, %v100_v36 }
  0xd0   :  { %v162_v25 = vsel %vm154_vm1, %v78_v15, 0 }
  0xd1   :  { %v105_v41 = vmul.f32 %v101_v37, %v101_v37  ;;  %v106_v42 = vmul.f32 %v102_v38, %v102_v38  ;;  %v107_v43 = vmul.f32 %v103_v39, %v103_v39  ;;  %v108_v45 = vmul.f32 %v104_v40, %v104_v40 }
  0xd2   :  { %v1065_v32 = vand.u32 4294901760, %v162_v25 }
  0xd3   :  { %v109_v44 = vadd.f32 %v106_v42, %v105_v41  ;;  %v198_v41 = vsub.f32 %v1053_v21, %v197_v31 }
  0xd4   :  { %v204_v42 = vsub.f32 %v162_v25, %v1065_v32 }
  0xd5   :  { %v110_v46 = vadd.f32 %v109_v44, %v107_v43 }
  0xd7   :  { %v111_v47 = vadd.f32 %v110_v46, %v108_v45 }
  0xd9   :  { %v112_v48 = vrot.slane %v111_v47, 4 }
  0xdb   :  { %v113_v49 = vadd.f32 %v112_v48, %v111_v47  ;;  %v814_v47 = vld [vmem:[%s1179_s5] sm:$0xff]  ;;  %v199_v48 = vand.u32 4294901760, %v198_v41 }
  0xdc   :  { %864 = vperm.xlu1 %910, %v814_v47  }
  0xdd   :  { %v114_v50 = vrot.slane %v113_v49, 2 }
  0xdf   :  { %v115_v51 = vadd.f32 %v114_v50, %v113_v49  ;;  %v205_v49 = vand.u32 4294901760, %v204_v42 }
  0xe1   :  { %v116_v52 = vrot.slane %v115_v51, 1  ;;  %912 = vset.pattern.permute.xlu0 %v922_v56 }
  0xe3   :  { %v117_v53 = vadd.f32 %v116_v52, %v115_v51  ;;  %v206_v52 = vsub.f32 %v204_v42, %v205_v49 }
  0xe5   :  { %v118_v54 = vmul.f32 %v117_v53, %v1011_v34  ;;  %v207_v56 = vand.u32 4294901760, %v206_v52 }
  0xe7   :  { %v119_v55 = vadd.f32 1e-05, %v118_v54  ;;  %v82_v54 = vld [vmem:[%s1176_s2 + $0x10] sm:$0xff] }
  0xe8   :  { %146 = vperm.xlu2 %911, %v82_v54  }
  0xe9   :  { %915 = vrsqrt.f32 %v119_v55  ;;  %vm126_vm3 = vweird.f32 %v119_v55 }
  0xef   :  { %v916_v59 = vpop.eup %915 }
  0xf0   :  { %v121_v61 = vmul.f32 %v916_v59, %v119_v55  ;;  %vm127_vm2 = vweird.f32 %v916_v59  ;;  %v816_v55 = vld [vmem:[%s1179_s5 + $0x10] sm:$0xff]  ;;  %151 = vperm.xlu2 %911, %v83_v60  }
  0xf1   :  { %vm128_vm4 = vmor %vm126_vm3, %vm127_vm2  ;;  %874 = vperm.xlu1 %910, %v816_v55  }
  0xf2   :  { %v122_v62 = vmul.f32 %v916_v59, %v121_v61 }
  0xf4   :  { %v123_v1 = vmul.f32 0.5, %v122_v62  ;;  %v818_v62 = vld [vmem:[#allocation2] sm:$0x1] }
  0xf6   :  { %v124_v3 = vsub.f32 1.5, %v123_v1  ;;  %v456_v1 = vld [vmem:[%s1178_s4 + $0x18] sm:$0xff] }
  0xf8   :  { %v125_v6 = vmul.f32 %v916_v59, %v124_v3  ;;  %507 = vperm.xlu2 %911, %v454_v0   ;;  %v817_v3 = vld [vmem:[%s1179_s5 + $0x18] sm:$0xff] }
  0xf9   :  { %897 = vperm.xlu1 %910, %v818_v62  }
  0xfa   :  { %v129_v7 = vsel %vm128_vm4, %v916_v59, %v125_v6 }
  0xfb   :  { %v133_v11 = vmul.f32 %v129_v7, %v104_v40  ;;  %v132_v12 = vmul.f32 %v129_v7, %v103_v39  ;;  %v131_v13 = vmul.f32 %v129_v7, %v102_v38  ;;  %v130_v14 = vmul.f32 %v129_v7, %v101_v37  ;;  %v79_v38 = vld [vmem:[%s1177_s1 + $0x18] sm:$0xff] }
  0xfc   :  { %v165_v45 = vsel %vm154_vm1, %v79_v38, 0 }
  0xfd   :  { %v1043_v16 = vand.u32 4294901760, %v133_v11  ;;  %v1045_v17 = vand.u32 4294901760, %v132_v12  ;;  %v1047_v18 = vand.u32 4294901760, %v131_v13  ;;  %v1049_v19 = vand.u32 4294901760, %v130_v14 }
  0xfe   :  { %v211_v50 = vand.u32 4294901760, %v165_v45 }
  0xff   :  { %180 = vmatpush.msra.mxu0 %v1043_v16  ;;  %331 = vmatpush.msra.mxu3 %v1043_v16  ;;  %v233_v22 = vsub.f32 %v133_v11, %v1043_v16  ;;  %v239_v23 = vsub.f32 %v132_v12, %v1045_v17  ;;  %v245_v24 = vsub.f32 %v131_v13, %v1047_v18  ;;  %v137_v13 = vpop.permute.xlu1 %136 }
 0x100   :  { %v251_v26 = vsub.f32 %v130_v14, %v1049_v19  ;;  %v212_v53 = vsub.f32 %v165_v45, %v211_v50  ;;  %517 = vperm.xlu2 %911, %v456_v1  }
 0x101   :  { %182 = vmatpush.msra.mxu0 %v1045_v17  ;;  %287 = vmatpush.msra.mxu2 %v233_v22  ;;  %v234_v27 = vand.u32 4294901760, %v233_v22  ;;  %v240_v28 = vand.u32 4294901760, %v239_v23  ;;  %v246_v29 = vand.u32 4294901760, %v245_v24 }
 0x102   :  { %333 = vmatpush.msra.mxu3 %v1045_v17  ;;  %v252_v37 = vand.u32 4294901760, %v251_v26  ;;  %v213_v57 = vand.u32 4294901760, %v212_v53 }
 0x103   :  { %184 = vmatpush.msra.mxu0 %v1047_v18  ;;  %290 = vmatpush.msra.mxu2 %v239_v23  ;;  %v235_v35 = vsub.f32 %v233_v22, %v234_v27  ;;  %v241_v36 = vsub.f32 %v239_v23, %v240_v28  ;;  %v247_v40 = vsub.f32 %v245_v24, %v246_v29 }
 0x104   :  { %335 = vmatpush.msra.mxu3 %v1047_v18  ;;  %v253_v44 = vsub.f32 %v251_v26, %v252_v37  ;;  %v214_v59 = vsub.f32 %v212_v53, %v213_v57 }
 0x105   :  { %186 = vmatpush.msra.mxu0 %v1049_v19  ;;  %293 = vmatpush.msra.mxu2 %v245_v24  ;;  %v236_v39 = vand.u32 4294901760, %v235_v35  ;;  %v242_v43 = vand.u32 4294901760, %v241_v36  ;;  %v248_v46 = vand.u32 4294901760, %v247_v40 }
 0x106   :  { %337 = vmatpush.msra.mxu3 %v1049_v19  ;;  %192 = vmatmul.f32.vlgmr.msra.gmra.mxu0 %v191_v30  ;;  %v254_v51 = vand.u32 4294901760, %v253_v44  ;;  %v215_v61 = vand.u32 4294901760, %v214_v59 }
 0x107   :  { %378 = vmatpush.msrb.mxu0 %v234_v27  ;;  %237 = vmatpush.msra.mxu1 %v236_v39 }
 0x108   :  { %296 = vmatpush.msra.mxu2 %v251_v26  ;;  %341 = vmatmul.f32.vlgmr.msra.gmra.mxu3 %v189_v8 }
 0x109   :  { %382 = vmatpush.msrb.mxu0 %v240_v28  ;;  %243 = vmatpush.msra.mxu1 %v242_v43 }
 0x10a   :  { %299 = vmatmul.f32.vlgmr.msra.gmra.mxu2 %v1031_v4  ;;  %869 = vperm.xlu2 %911, %v815_v2  }
 0x10b   :  { %386 = vmatpush.msrb.mxu0 %v246_v29  ;;  %249 = vmatpush.msra.mxu1 %v248_v46 }
 0x10d   :  { %390 = vmatpush.msrb.mxu0 %v252_v37  ;;  %255 = vmatpush.msra.mxu1 %v254_v51 }
 0x10e   :  { %200 = vmatmul.f32.gmra.mxu0 %v199_v48  ;;  %257 = vmatmul.f32.vlgmr.msra.gmra.mxu1 %v1022_v63 }
 0x10f   :  { %421 = vmatpush.msrb.mxu1 %v1043_v16 }
 0x110   :  { %347 = vmatmul.f32.gmra.mxu3 %v197_v31 }
 0x111   :  { %423 = vmatpush.msrb.mxu1 %v1045_v17 }
 0x112   :  { %304 = vmatmul.f32.gmra.mxu2 %v1053_v21  ;;  %879 = vperm.xlu2 %911, %v817_v3  }
 0x113   :  { %425 = vmatpush.msrb.mxu1 %v1047_v18  ;;  %v142_v18 = vpop.permute.xlu1 %141 }
 0x115   :  { %427 = vmatpush.msrb.mxu1 %v1049_v19 }
 0x116   :  { %208 = vmatmul.f32.gmra.mxu0 %v207_v56  ;;  %261 = vmatmul.f32.gmra.mxu1 %v1035_v9 }
 0x118   :  { %353 = vmatmul.f32.gmra.mxu3 %v205_v49 }
 0x11a   :  { %309 = vmatmul.f32.gmra.mxu2 %v204_v42 }
 0x11e   :  { %216 = vmatmul.f32.gmra.mxu0 %v215_v61  ;;  %265 = vmatmul.f32.gmra.mxu1 %v1065_v32 }
 0x120   :  { %359 = vmatmul.f32.gmra.mxu3 %v213_v57 }
 0x122   :  { %314 = vmatmul.f32.gmra.mxu2 %v212_v53 }
 0x126   :  { %269 = vmatmul.f32.gmra.mxu1 %v211_v50  ;;  %392 = vmatmul.f32.vlgmr.msrb.gmra.mxu0 %v1022_v63 }
 0x12e   :  { %396 = vmatmul.f32.gmra.mxu0 %v1035_v9  ;;  %429 = vmatmul.f32.vlgmr.msrb.gmra.mxu1 %v1022_v63 }
 0x136   :  { %400 = vmatmul.f32.gmra.mxu0 %v1065_v32  ;;  %433 = vmatmul.f32.gmra.mxu1 %v1035_v9 }
 0x13e   :  { %404 = vmatmul.f32.gmra.mxu0 %v211_v50  ;;  %437 = vmatmul.f32.gmra.mxu1 %v1065_v32 }
 0x142   :  { %v147_v17 = vpop.permute.xlu2 %146 }
 0x146   :  { %441 = vmatmul.f32.gmra.mxu1 %v211_v50 }
 0x14a   :  { %v152_v27 = vpop.permute.xlu2 %151 }
 0x183   :  { %v193_v4 = vpop.f32.mrf.mxu0 }
 0x184   :  { %v194_v22 = vadd.f32 %v193_v4, %v137_v13 }
 0x18b   :  { %v201_v5 = vpop.f32.mrf.mxu0  ;;  %v258_v6 = vpop.f32.mrf.mxu1 }
 0x18c   :  { %v342_v12 = vpop.f32.mrf.mxu3  ;;  %v202_v21 = vadd.f32 %v201_v5, %v142_v18  ;;  %v259_v26 = vadd.f32 %v258_v6, %v194_v22 }
 0x18d   :  { %v300_v63 = vpop.f32.mrf.mxu2 }
 0x18e   :  { %v301_v35 = vadd.f32 %v300_v63, %v259_v26 }
 0x190   :  { %v343_v40 = vadd.f32 %v342_v12, %v301_v35 }
 0x193   :  { %v209_v7 = vpop.f32.mrf.mxu0  ;;  %v262_v8 = vpop.f32.mrf.mxu1 }
 0x194   :  { %v348_v9 = vpop.f32.mrf.mxu3  ;;  %v210_v23 = vadd.f32 %v209_v7, %v147_v17  ;;  %v263_v25 = vadd.f32 %v262_v8, %v202_v21 }
 0x195   :  { %v305_v16 = vpop.f32.mrf.mxu2 }
 0x196   :  { %v306_v31 = vadd.f32 %v305_v16, %v263_v25  ;;  %v449_v25 = vld [vmem:[%s1181_s3] sm:$0xff] }
 0x198   :  { %v349_v37 = vadd.f32 %v348_v9, %v306_v31 }
 0x19b   :  { %v217_v10 = vpop.f32.mrf.mxu0  ;;  %v266_v11 = vpop.f32.mrf.mxu1 }
 0x19c   :  { %v267_v28 = vadd.f32 %v266_v11, %v210_v23  ;;  %v354_v29 = vpop.f32.mrf.mxu3  ;;  %v218_v32 = vadd.f32 %v217_v10, %v152_v27  ;;  %v521_v27 = vsel %vm154_vm1, %v449_v25, 0 }
 0x19d   :  { %v310_v24 = vpop.f32.mrf.mxu2 }
 0x19e   :  { %v311_v36 = vadd.f32 %v310_v24, %v267_v28 }
 0x1a0   :  { %v355_v41 = vadd.f32 %v354_v29, %v311_v36 }
 0x1a3   :  { %v270_v14 = vpop.f32.mrf.mxu1  ;;  %v393_v15 = vpop.f32.mrf.mxu0 }
 0x1a4   :  { %v271_v38 = vadd.f32 %v270_v14, %v218_v32  ;;  %v394_v44 = vadd.f32 %v393_v15, %v343_v40  ;;  %v360_v48 = vpop.f32.mrf.mxu3  ;;  %v450_v32 = vld [vmem:[%s1181_s3 + $0x8] sm:$0xff] }
 0x1a5   :  { %v315_v39 = vpop.f32.mrf.mxu2  ;;  %v524_v36 = vsel %vm154_vm1, %v450_v32, 0 }
 0x1a6   :  { %v316_v45 = vadd.f32 %v315_v39, %v271_v38  ;;  %v1135_v40 = vand.u32 4294901760, %v524_v36 }
 0x1a8   :  { %v361_v52 = vadd.f32 %v360_v48, %v316_v45  ;;  %v451_v45 = vld [vmem:[%s1181_s3 + $0x10] sm:$0xff] }
 0x1ab   :  { %v397_v19 = vpop.f32.mrf.mxu0  ;;  %v430_v20 = vpop.f32.mrf.mxu1 }
 0x1ac   :  { %v398_v42 = vadd.f32 %v397_v19, %v349_v37  ;;  %v431_v49 = vadd.f32 %v430_v20, %v394_v44 }
 0x1ae   :  { %v445_v54 = vmax.f32 %v431_v49, 0.0 }
 0x1b3   :  { %v434_v30 = vpop.f32.mrf.mxu1  ;;  %v401_v33 = vpop.f32.mrf.mxu0 }
 0x1b4   :  { %v402_v46 = vadd.f32 %v401_v33, %v355_v41  ;;  %v435_v47 = vadd.f32 %v434_v30, %v398_v42  ;;  %v1128_v30 = vand.u32 4294901760, %v521_v27 }
 0x1b6   :  { %v446_v53 = vmax.f32 %v435_v47, 0.0  ;;  %v553_v35 = vsub.f32 %v521_v27, %v1128_v30 }
 0x1b8   :  { %v457_v58 = vadd.f32 %v446_v53, %v445_v54  ;;  %v554_v39 = vand.u32 4294901760, %v553_v35 }
 0x1bb   :  { %v438_v43 = vpop.f32.mrf.mxu1  ;;  %v405_v51 = vpop.f32.mrf.mxu0 }
 0x1bc   :  { %v439_v50 = vadd.f32 %v438_v43, %v402_v46  ;;  %v406_v55 = vadd.f32 %v405_v51, %v361_v52  ;;  %v561_v51 = vsub.f32 %v524_v36, %v1135_v40  ;;  %v508_v36 = vpop.permute.xlu2 %507 }
 0x1be   :  { %v447_v56 = vmax.f32 %v439_v50, 0.0  ;;  %v555_v50 = vsub.f32 %v553_v35, %v554_v39 }
 0x1c0   :  { %v458_v60 = vadd.f32 %v457_v58, %v447_v56 }
 0x1c3   :  { %v442_v57 = vpop.f32.mrf.mxu1 }
 0x1c4   :  { %v443_v59 = vadd.f32 %v442_v57, %v406_v55  ;;  %v527_v55 = vsel %vm154_vm1, %v451_v45, 0 }
 0x1c6   :  { %v448_v61 = vmax.f32 %v443_v59, 0.0 }
 0x1c8   :  { %v459_v62 = vadd.f32 %v458_v60, %v448_v61  ;;  %v556_v60 = vand.u32 4294901760, %v555_v50  ;;  %v518_v50 = vpop.permute.xlu2 %517 }
 0x1ca   :  { %v460_v0 = vrot.slane %v459_v62, 4 }
 0x1cc   :  { %v461_v1 = vadd.f32 %v460_v0, %v459_v62  ;;  %v1148_v62 = vand.u32 4294901760, %v527_v55 }
 0x1ce   :  { %v462_v2 = vrot.slane %v461_v1, 2 }
 0x1d0   :  { %v463_v3 = vadd.f32 %v462_v2, %v461_v1 }
 0x1d2   :  { %v464_v4 = vrot.slane %v463_v3, 1 }
 0x1d4   :  { %v465_v5 = vadd.f32 %v464_v4, %v463_v3  ;;  %v452_v3 = vld [vmem:[%s1181_s3 + $0x18] sm:$0xff] }
 0x1d6   :  { %v466_v6 = vmul.f32 %v465_v5, %v1011_v34 }
 0x1d8   :  { %v467_v7 = vsub.f32 %v445_v54, %v466_v6  ;;  %v468_v8 = vsub.f32 %v446_v53, %v466_v6  ;;  %v469_v63 = vsub.f32 %v447_v56, %v466_v6  ;;  %v470_v10 = vsub.f32 %v448_v61, %v466_v6 }
 0x1d9   :  { %v562_v61 = vand.u32 4294901760, %v561_v51 }
 0x1da   :  { %v471_v11 = vmul.f32 %v467_v7, %v467_v7  ;;  %v472_v12 = vmul.f32 %v468_v8, %v468_v8  ;;  %v473_v13 = vmul.f32 %v469_v63, %v469_v63  ;;  %v474_v15 = vmul.f32 %v470_v10, %v470_v10 }
 0x1db   :  { %v563_v6 = vsub.f32 %v561_v51, %v562_v61 }
 0x1dc   :  { %v475_v14 = vadd.f32 %v472_v12, %v471_v11 }
 0x1dd   :  { %v564_v12 = vand.u32 4294901760, %v563_v6 }
 0x1de   :  { %v476_v16 = vadd.f32 %v475_v14, %v473_v13 }
 0x1e0   :  { %v477_v17 = vadd.f32 %v476_v16, %v474_v15 }
 0x1e2   :  { %v478_v9 = vrot.slane %v477_v17, 4 }
 0x1e4   :  { %v479_v18 = vadd.f32 %v478_v9, %v477_v17 }
 0x1e6   :  { %v480_v19 = vrot.slane %v479_v18, 2 }
 0x1e8   :  { %v481_v20 = vadd.f32 %v480_v19, %v479_v18 }
 0x1ea   :  { %v482_v21 = vrot.slane %v481_v20, 1 }
 0x1ec   :  { %v483_v22 = vadd.f32 %v482_v21, %v481_v20 }
 0x1ee   :  { %v484_v23 = vmul.f32 %v483_v22, %v1011_v34 }
 0x1f0   :  { %v485_v24 = vadd.f32 1e-05, %v484_v23 }
 0x1f2   :  { %917 = vrsqrt.f32 %v485_v24  ;;  %vm492_vm6 = vweird.f32 %v485_v24 }
 0x1f8   :  { %v918_v26 = vpop.eup %917 }
 0x1f9   :  { %v487_v28 = vmul.f32 %v918_v26, %v485_v24  ;;  %vm493_vm5 = vweird.f32 %v918_v26 }
 0x1fa   :  { %vm494_vm7 = vmor %vm492_vm6, %vm493_vm5 }
 0x1fb   :  { %v488_v29 = vmul.f32 %v918_v26, %v487_v28 }
 0x1fd   :  { %v489_v31 = vmul.f32 0.5, %v488_v29 }
 0x1ff   :  { %v490_v33 = vsub.f32 1.5, %v489_v31 }
 0x201   :  { %v491_v37 = vmul.f32 %v918_v26, %v490_v33 }
 0x203   :  { %v495_v38 = vsel %vm494_vm7, %v918_v26, %v491_v37 }
 0x204   :  { %v499_v41 = vmul.f32 %v495_v38, %v470_v10  ;;  %v498_v42 = vmul.f32 %v495_v38, %v469_v63  ;;  %v497_v43 = vmul.f32 %v495_v38, %v468_v8  ;;  %v496_v44 = vmul.f32 %v495_v38, %v467_v7 }
 0x205   :  { %v569_v7 = vsub.f32 %v527_v55, %v1148_v62  ;;  %v530_v10 = vsel %vm154_vm1, %v452_v3, 0 }
 0x206   :  { %v544_v46 = vand.u32 4294901760, %v499_v41  ;;  %v546_v47 = vand.u32 4294901760, %v498_v42  ;;  %v1140_v48 = vand.u32 4294901760, %v497_v43  ;;  %v1142_v49 = vand.u32 4294901760, %v496_v44 }
 0x207   :  { %v570_v13 = vand.u32 4294901760, %v569_v7  ;;  %v576_v14 = vand.u32 4294901760, %v530_v10 }
 0x208   :  { %v598_v52 = vsub.f32 %v499_v41, %v544_v46  ;;  %545 = vmatpush.msrb.mxu2 %v544_v46  ;;  %696 = vmatpush.msra.mxu1 %v544_v46  ;;  %v604_v53 = vsub.f32 %v498_v42, %v546_v47  ;;  %v610_v54 = vsub.f32 %v497_v43, %v1140_v48 }
 0x209   :  { %v616_v56 = vsub.f32 %v496_v44, %v1142_v49  ;;  %v571_v16 = vsub.f32 %v569_v7, %v570_v13  ;;  %v577_v17 = vsub.f32 %v530_v10, %v576_v14 }
 0x20a   :  { %547 = vmatpush.msrb.mxu2 %v546_v47  ;;  %652 = vmatpush.msra.mxu0 %v598_v52  ;;  %v599_v57 = vand.u32 4294901760, %v598_v52  ;;  %v605_v58 = vand.u32 4294901760, %v604_v53  ;;  %v611_v59 = vand.u32 4294901760, %v610_v54 }
 0x20b   :  { %698 = vmatpush.msra.mxu1 %v546_v47  ;;  %v617_v2 = vand.u32 4294901760, %v616_v56  ;;  %v572_v9 = vand.u32 4294901760, %v571_v16  ;;  %v578_v18 = vand.u32 4294901760, %v577_v17 }
 0x20c   :  { %549 = vmatpush.msrb.mxu2 %v1140_v48  ;;  %655 = vmatpush.msra.mxu0 %v604_v53  ;;  %v600_v0 = vsub.f32 %v598_v52, %v599_v57  ;;  %v606_v1 = vsub.f32 %v604_v53, %v605_v58  ;;  %v612_v5 = vsub.f32 %v610_v54, %v611_v59 }
 0x20d   :  { %700 = vmatpush.msra.mxu1 %v1140_v48  ;;  %v618_v63 = vsub.f32 %v616_v56, %v617_v2  ;;  %v579_v19 = vsub.f32 %v577_v17, %v578_v18 }
 0x20e   :  { %551 = vmatpush.msrb.mxu2 %v1142_v49  ;;  %658 = vmatpush.msra.mxu0 %v610_v54  ;;  %v601_v4 = vand.u32 4294901760, %v600_v0  ;;  %v607_v8 = vand.u32 4294901760, %v606_v1  ;;  %v613_v11 = vand.u32 4294901760, %v612_v5 }
 0x20f   :  { %702 = vmatpush.msra.mxu1 %v1142_v49  ;;  %557 = vmatmul.f32.vlgmr.msrb.gmra.mxu2 %v556_v60  ;;  %v619_v15 = vand.u32 4294901760, %v618_v63  ;;  %v580_v20 = vand.u32 4294901760, %v579_v19 }
 0x210   :  { %743 = vmatpush.msra.mxu2 %v599_v57  ;;  %602 = vmatpush.msrb.mxu3 %v601_v4 }
 0x211   :  { %661 = vmatpush.msra.mxu0 %v616_v56  ;;  %706 = vmatmul.f32.vlgmr.msra.gmra.mxu1 %v554_v39 }
 0x212   :  { %747 = vmatpush.msra.mxu2 %v605_v58  ;;  %608 = vmatpush.msrb.mxu3 %v607_v8 }
 0x213   :  { %664 = vmatmul.f32.vlgmr.msra.gmra.mxu0 %v553_v35 }
 0x214   :  { %751 = vmatpush.msra.mxu2 %v611_v59  ;;  %614 = vmatpush.msrb.mxu3 %v613_v11 }
 0x216   :  { %755 = vmatpush.msra.mxu2 %v617_v2  ;;  %620 = vmatpush.msrb.mxu3 %v619_v15 }
 0x217   :  { %565 = vmatmul.f32.gmra.mxu2 %v564_v12  ;;  %622 = vmatmul.f32.vlgmr.msrb.gmra.mxu3 %v1128_v30 }
 0x218   :  { %786 = vmatpush.msra.mxu3 %v544_v46 }
 0x219   :  { %712 = vmatmul.f32.gmra.mxu1 %v562_v61 }
 0x21a   :  { %788 = vmatpush.msra.mxu3 %v546_v47 }
 0x21b   :  { %669 = vmatmul.f32.gmra.mxu0 %v561_v51 }
 0x21c   :  { %790 = vmatpush.msra.mxu3 %v1140_v48 }
 0x21e   :  { %792 = vmatpush.msra.mxu3 %v1142_v49 }
 0x21f   :  { %573 = vmatmul.f32.gmra.mxu2 %v572_v9  ;;  %626 = vmatmul.f32.gmra.mxu3 %v1135_v40 }
 0x221   :  { %718 = vmatmul.f32.gmra.mxu1 %v570_v13 }
 0x223   :  { %674 = vmatmul.f32.gmra.mxu0 %v569_v7 }
 0x227   :  { %581 = vmatmul.f32.gmra.mxu2 %v580_v20  ;;  %630 = vmatmul.f32.gmra.mxu3 %v1148_v62 }
 0x229   :  { %724 = vmatmul.f32.gmra.mxu1 %v578_v18 }
 0x22b   :  { %679 = vmatmul.f32.gmra.mxu0 %v577_v17 }
 0x22f   :  { %634 = vmatmul.f32.gmra.mxu3 %v576_v14  ;;  %757 = vmatmul.f32.vlgmr.msra.gmra.mxu2 %v1128_v30 }
 0x237   :  { %761 = vmatmul.f32.gmra.mxu2 %v1135_v40  ;;  %794 = vmatmul.f32.vlgmr.msra.gmra.mxu3 %v1128_v30  ;;  %v503_v30 = vpop.permute.xlu1 %502 }
 0x23f   :  { %765 = vmatmul.f32.gmra.mxu2 %v1148_v62  ;;  %798 = vmatmul.f32.gmra.mxu3 %v1135_v40  ;;  %v513_v40 = vpop.permute.xlu1 %512 }
 0x247   :  { %769 = vmatmul.f32.gmra.mxu2 %v576_v14  ;;  %802 = vmatmul.f32.gmra.mxu3 %v1148_v62 }
 0x24f   :  { %806 = vmatmul.f32.gmra.mxu3 %v576_v14 }
 0x28e   :  { %v707_v29 = vpop.f32.mrf.mxu1 }
 0x290   :  { %v665_v26 = vpop.f32.mrf.mxu0 }
 0x292   :  { %v558_v21 = vpop.f32.mrf.mxu2 }
 0x293   :  { %v559_v42 = vadd.f32 %v558_v21, %v503_v30 }
 0x296   :  { %v713_v35 = vpop.f32.mrf.mxu1 }
 0x298   :  { %v670_v33 = vpop.f32.mrf.mxu0 }
 0x29a   :  { %v566_v22 = vpop.f32.mrf.mxu2  ;;  %v623_v23 = vpop.f32.mrf.mxu3 }
 0x29b   :  { %v567_v39 = vadd.f32 %v566_v22, %v508_v36  ;;  %v624_v45 = vadd.f32 %v623_v23, %v559_v42 }
 0x29d   :  { %v666_v52 = vadd.f32 %v665_v26, %v624_v45 }
 0x29e   :  { %v719_v47 = vpop.f32.mrf.mxu1 }
 0x29f   :  { %v708_v58 = vadd.f32 %v707_v29, %v666_v52 }
 0x2a0   :  { %v675_v41 = vpop.f32.mrf.mxu0 }
 0x2a2   :  { %v574_v24 = vpop.f32.mrf.mxu2  ;;  %v627_v25 = vpop.f32.mrf.mxu3 }
 0x2a3   :  { %v575_v43 = vadd.f32 %v574_v24, %v513_v40  ;;  %v628_v44 = vadd.f32 %v627_v25, %v567_v39 }
 0x2a5   :  { %v671_v49 = vadd.f32 %v670_v33, %v628_v44 }
 0x2a6   :  { %v725_v3 = vpop.f32.mrf.mxu1 }
 0x2a7   :  { %v714_v55 = vadd.f32 %v713_v35, %v671_v49  ;;  %v870_v49 = vpop.permute.xlu2 %869 }
 0x2a8   :  { %v680_v57 = vpop.f32.mrf.mxu0 }
 0x2aa   :  { %v582_v27 = vpop.f32.mrf.mxu2  ;;  %v631_v28 = vpop.f32.mrf.mxu3 }
 0x2ab   :  { %v632_v46 = vadd.f32 %v631_v28, %v575_v43  ;;  %v583_v53 = vadd.f32 %v582_v27, %v518_v50 }
 0x2ad   :  { %v676_v54 = vadd.f32 %v675_v41, %v632_v46 }
 0x2af   :  { %v720_v59 = vadd.f32 %v719_v47, %v676_v54  ;;  %v865_v47 = vpop.permute.xlu1 %864 }
 0x2b2   :  { %v635_v31 = vpop.f32.mrf.mxu3  ;;  %v758_v32 = vpop.f32.mrf.mxu2 }
 0x2b3   :  { %v636_v56 = vadd.f32 %v635_v31, %v583_v53  ;;  %v759_v62 = vadd.f32 %v758_v32, %v708_v58 }
 0x2b5   :  { %v681_v0 = vadd.f32 %v680_v57, %v636_v56 }
 0x2b7   :  { %v726_v7 = vadd.f32 %v725_v3, %v681_v0  ;;  %v875_v58 = vpop.permute.xlu1 %874 }
 0x2ba   :  { %v762_v37 = vpop.f32.mrf.mxu2  ;;  %v795_v38 = vpop.f32.mrf.mxu3 }
 0x2bb   :  { %v763_v60 = vadd.f32 %v762_v37, %v714_v55  ;;  %v796_v4 = vadd.f32 %v795_v38, %v759_v62 }
 0x2bd   :  { %v810_v63 = vmax.f32 %v796_v4, 0.0 }
 0x2c2   :  { %v799_v48 = vpop.f32.mrf.mxu3  ;;  %v766_v51 = vpop.f32.mrf.mxu2 }
 0x2c3   :  { %v767_v1 = vadd.f32 %v766_v51, %v720_v59  ;;  %v800_v2 = vadd.f32 %v799_v48, %v763_v60 }
 0x2c5   :  { %v811_v8 = vmax.f32 %v800_v2, 0.0 }
 0x2c7   :  { %v819_v13 = vadd.f32 %v811_v8, %v810_v63 }
 0x2ca   :  { %v803_v61 = vpop.f32.mrf.mxu3  ;;  %v770_v6 = vpop.f32.mrf.mxu2 }
 0x2cb   :  { %v804_v5 = vadd.f32 %v803_v61, %v767_v1  ;;  %v771_v10 = vadd.f32 %v770_v6, %v726_v7  ;;  %v880_v61 = vpop.permute.xlu2 %879  ;;  %v898_v6 = vpop.permute.xlu1 %897 }
 0x2cd   :  { %v812_v11 = vmax.f32 %v804_v5, 0.0 }
 0x2cf   :  { %v820_v15 = vadd.f32 %v819_v13, %v812_v11 }
 0x2d2   :  { %v807_v12 = vpop.f32.mrf.mxu3 }
 0x2d3   :  { %v808_v14 = vadd.f32 %v807_v12, %v771_v10 }
 0x2d5   :  { %v813_v16 = vmax.f32 %v808_v14, 0.0 }
 0x2d7   :  { %v821_v17 = vadd.f32 %v820_v15, %v813_v16 }
 0x2d9   :  { %v822_v9 = vrot.slane %v821_v17, 4 }
 0x2db   :  { %v823_v18 = vadd.f32 %v822_v9, %v821_v17 }
 0x2dd   :  { %v824_v19 = vrot.slane %v823_v18, 2 }
 0x2df   :  { %v825_v20 = vadd.f32 %v824_v19, %v823_v18 }
 0x2e1   :  { %v826_v21 = vrot.slane %v825_v20, 1 }
 0x2e3   :  { %v827_v22 = vadd.f32 %v826_v21, %v825_v20 }
 0x2e5   :  { %v828_v23 = vmul.f32 %v827_v22, %v1011_v34 }
 0x2e7   :  { %v829_v24 = vsub.f32 %v810_v63, %v828_v23  ;;  %v830_v25 = vsub.f32 %v811_v8, %v828_v23  ;;  %v831_v26 = vsub.f32 %v812_v11, %v828_v23  ;;  %v832_v27 = vsub.f32 %v813_v16, %v828_v23 }
 0x2e8   :  { %v900_v8 = vperm.slane %v898_v6, 0 }
 0x2e9   :  { %v833_v28 = vmul.f32 %v829_v24, %v829_v24  ;;  %v834_v29 = vmul.f32 %v830_v25, %v830_v25  ;;  %v835_v31 = vmul.f32 %v831_v26, %v831_v26  ;;  %v836_v30 = vmul.f32 %v832_v27, %v832_v27 }
 0x2eb   :  { %v837_v32 = vadd.f32 %v834_v29, %v833_v28 }
 0x2ed   :  { %v838_v33 = vadd.f32 %v837_v32, %v835_v31 }
 0x2ef   :  { %v839_v35 = vadd.f32 %v838_v33, %v836_v30 }
 0x2f1   :  { %v840_v36 = vrot.slane %v839_v35, 4 }
 0x2f3   :  { %v841_v37 = vadd.f32 %v840_v36, %v839_v35 }
 0x2f5   :  { %v842_v38 = vrot.slane %v841_v37, 2 }
 0x2f7   :  { %v843_v39 = vadd.f32 %v842_v38, %v841_v37 }
 0x2f9   :  { %v844_v40 = vrot.slane %v843_v39, 1 }
 0x2fb   :  { %v845_v41 = vadd.f32 %v844_v40, %v843_v39 }
 0x2fd   :  { %v846_v42 = vmul.f32 %v845_v41, %v1011_v34 }
 0x2ff   :  { %v847_v43 = vadd.f32 1e-05, %v846_v42 }
 0x301   :  { %919 = vrsqrt.f32 %v847_v43  ;;  %vm854_vm9 = vweird.f32 %v847_v43 }
 0x307   :  { %v920_v44 = vpop.eup %919 }
 0x308   :  { %v849_v45 = vmul.f32 %v920_v44, %v847_v43  ;;  %vm855_vm8 = vweird.f32 %v920_v44 }
 0x309   :  { %vm856_vm10 = vmor %vm854_vm9, %vm855_vm8 }
 0x30a   :  { %v850_v46 = vmul.f32 %v920_v44, %v849_v45 }
 0x30c   :  { %v851_v48 = vmul.f32 0.5, %v850_v46 }
 0x30e   :  { %v852_v50 = vsub.f32 1.5, %v851_v48 }
 0x310   :  { %v853_v51 = vmul.f32 %v920_v44, %v852_v50 }
 0x312   :  { %v857_v52 = vsel %vm856_vm10, %v920_v44, %v853_v51 }
 0x313   :  { %v858_v53 = vmul.f32 %v857_v52, %v829_v24  ;;  %v859_v54 = vmul.f32 %v857_v52, %v830_v25  ;;  %v860_v55 = vmul.f32 %v857_v52, %v831_v26  ;;  %v861_v56 = vmul.f32 %v857_v52, %v832_v27 }
 0x315   :  { %v882_v57 = vmul.f32 %v865_v47, %v858_v53  ;;  %v883_v34 = vmul.f32 %v870_v49, %v859_v54  ;;  %v884_v59 = vmul.f32 %v875_v58, %v860_v55  ;;  %v885_v62 = vmul.f32 %v880_v61, %v861_v56 }
 0x317   :  { %v886_v60 = vadd.f32 %v883_v34, %v882_v57 }
 0x319   :  { %v887_v0 = vadd.f32 %v886_v60, %v884_v59 }
 0x31b   :  { %v888_v1 = vadd.f32 %v887_v0, %v885_v62 }
 0x31d   :  { %v889_v2 = vrot.slane %v888_v1, 4 }
 0x31f   :  { %v890_v3 = vadd.f32 %v889_v2, %v888_v1 }
 0x321   :  { %v891_v4 = vrot.slane %v890_v3, 2 }
 0x323   :  { %v892_v5 = vadd.f32 %v891_v4, %v890_v3 }
 0x325   :  { %v893_v7 = vrot.slane %v892_v5, 1 }
 0x327   :  { %v894_v63 = vadd.f32 %v893_v7, %v892_v5 }
 0x329   :  { %v901_v10 = vadd.f32 %v900_v8, %v894_v63 }
 0x32b   :  { %v902_v11 = vmax.f32 %v901_v10, 0.0 }
 0x32d   :  { %903 = vst [vmem:[%s1182_s7] sm:$0x1] %v902_v11 }

</bundles_post_ra>
